<compile_context>
chip_gen: v5e
topology: v5e:2x2
jax: 0.10.0
libtpu: 0.0.40
codegen_flags: <defaults>
</compile_context>

<pallas_src>
import functools

import jax
import jax.numpy as jnp
from jax import lax
from jax.experimental import pallas as pl
from jax.experimental.pallas import tpu as pltpu


# ----------------------------------------------------------------------------
# Fused kernel: whole MentorGNN forward (prediction branch)
# ----------------------------------------------------------------------------
def _fused_mentor_kernel(feats_ref, adj_t_ref, adj_s_ref, emb_s_ref,
                         gat_w_ref, gat_a1_ref, gat_a2_ref,
                         dpt0_ref, dps0_ref, trans_w_ref, trans_b_ref,
                         lblw_top_ref, lblw_bot_ref, lbla1_ref, lbla2_ref,
                         out_ref, *, alpha):
    f32 = jnp.float32
    bf16 = jnp.bfloat16

    def mxu(a, b):
        # bf16 operands on the MXU, f32 accumulation (3x fewer vmatmul passes than f32).
        return jnp.dot(a.astype(bf16), b.astype(bf16), preferred_element_type=f32)

    def mxu_t(a, b):
        # a.T @ b without materializing a transpose (contract a's first axis).
        # Kept f32: non-standard contraction dims + bf16 is the riskier lowering,
        # and this is a single tiny matmul.
        return lax.dot_general(a, b, (((0,), (0,)), ((), ())),
                               preferred_element_type=f32)

    def elu(x):
        # F.elu (alpha=1); exp(min(x,0))-1 kept over expm1 for lowering safety.
        return jnp.where(x > 0.0, x, jnp.exp(jnp.minimum(x, 0.0)) - 1.0)

    def row_softmax(x, exact=False):
        x = x - jnp.max(x, axis=1, keepdims=True)
        p = jnp.exp(x)
        s = jnp.sum(p, axis=1, keepdims=True)
        if exact:                       # exact divide for the final output
            return p / s
        return p * pl.reciprocal(s, approx=True)

    adj_t = adj_t_ref[...]
    # Attention mask bias computed once, reused by BOTH target attention layers.
    mask_bias = jnp.where(adj_t > 0.0, f32(0.0), f32(-9e15))

    def gat_attention(Wh, a1_row, a2_col):
        # e[i,j] = LeakyReLU(Wh[i]·a1 + Wh[j]·a2); mask; row softmax; attn @ Wh
        f1 = jnp.sum(Wh * a1_row, axis=1, keepdims=True)                # (N,1) VPU reduce
        f2 = lax.dot_general(a2_col, Wh, (((0,), (1,)), ((), ())),
                             preferred_element_type=f32)                # (1,N)
        e = f1 + f2
        e = jnp.where(e > 0.0, e, alpha * e)                            # LeakyReLU
        attn = row_softmax(e + mask_bias)                               # softmax(dim=1)
        return mxu(attn, Wh)

    def diffpool_assign(emb, adj, W):
        # GraphConv(normalize_embedding=True, no bias) -> softmax(dim=-1)
        y = mxu(mxu(adj, emb), W)
        nrm = jnp.sqrt(jnp.sum(y * y, axis=1, keepdims=True))           # F.normalize p=2 dim=1
        y = y / jnp.maximum(nrm, 1e-12)                                 # exact divide
        return row_softmax(y)

    # ---- base model: GAT_block, single head (eval: dropout = identity) ----
    Wh_t = mxu(feats_ref[...], gat_w_ref[...])
    emb_t0 = elu(gat_attention(Wh_t, gat_a1_ref[...], gat_a2_ref[...]))

    # ---- all source graphs at once (block-diagonal adj, column-offset embeddings) ----
    # Only level-0 of each hierarchy is consumed by the prediction branch.
    emb_s = emb_s_ref[...]                                              # (G*Np, G*h)
    P_s = diffpool_assign(emb_s, adj_s_ref[...], dps0_ref[...])         # (G*Np, s0)
    pooled = mxu_t(P_s, emb_s)                                          # (s0, G*h): col-block i = P_i.T @ E_i
    # transfer functions (Linear+ReLU), block-diagonal weight => cat_i(tk_i[0]) directly
    tk = jnp.maximum(mxu(pooled, trans_w_ref[...]) + trans_b_ref[...], 0.0)

    # ---- target hierarchy: only P_t[0] is consumed by the prediction branch ----
    P_t0 = diffpool_assign(emb_t0, adj_t, dpt0_ref[...])                # (N_t, s0)

    # ---- prediction: knowledge = [P_t0 @ tk | emb_t0];  knowledge @ label_W block-wise ----
    mix = mxu(tk, lblw_top_ref[...])                                    # (s0, class)
    Wh_label = mxu(P_t0, mix) + mxu(emb_t0, lblw_bot_ref[...])          # (N_t, class)
    h_prime = gat_attention(Wh_label, lbla1_ref[...], lbla2_ref[...])   # concat=False
    out_ref[...] = row_softmax(elu(h_prime), exact=True)                # softmax(elu(.), dim=1)


# ----------------------------------------------------------------------------
# MentorGNN.forward, prediction=True branch (eval mode)
# ----------------------------------------------------------------------------
def mentor_gnn_forward(params, g_s_adj, emb_source, g_t_feats, g_t_adj):
    num_graph = len(g_s_adj)
    h_dim = params["gat_W"].shape[1]
    class_num = params["label_W"].shape[1]
    N_t = g_t_feats.shape[0]

    # ---- one-time input / parameter prep (hoisted out of any real serving loop) ----
    # pad each source graph to one sublane-aligned size, then build a single
    # block-diagonal adjacency and column-offset embedding (zero rows/cols are
    # exact no-ops for everything the prediction branch consumes).
    n_pad = max(int(a.shape[0]) for a in g_s_adj)
    n_pad = -(-n_pad // 8) * 8
    Ns = num_graph * n_pad
    adj_bd = jnp.zeros((Ns, Ns), jnp.float32)
    emb_off = jnp.zeros((Ns, num_graph * h_dim), jnp.float32)
    for i in range(num_graph):
        n_i = int(g_s_adj[i].shape[0])
        adj_bd = adj_bd.at[i * n_pad:i * n_pad + n_i,
                           i * n_pad:i * n_pad + n_i].set(g_s_adj[i])
        emb_off = emb_off.at[i * n_pad:i * n_pad + n_i,
                             i * h_dim:(i + 1) * h_dim].set(emb_source[i])

    # level-0 diff-pool weights stacked vertically (matches column-offset emb)
    dps0_stack = jnp.concatenate([params["dp_s"][i][0] for i in range(num_graph)], axis=0)
    # level-0 transfer Linear as a block-diagonal weight + concatenated bias
    gh = num_graph * h_dim
    trans_w_bd = jnp.zeros((gh, gh), jnp.float32)
    for i in range(num_graph):
        trans_w_bd = trans_w_bd.at[i * h_dim:(i + 1) * h_dim,
                                   i * h_dim:(i + 1) * h_dim].set(params["trans"][i][0][0])
    trans_b = jnp.concatenate([params["trans"][i][0][1] for i in range(num_graph)], axis=1)
    # label_W split into the reconstructed-knowledge block and the emb_t0 block
    lblw_top = params["label_W"][:gh, :]
    lblw_bot = params["label_W"][gh:, :]
    # attention vectors split into the (row, column) terms
    gat_a1 = params["gat_a"][:h_dim, :].T          # (1, h)
    gat_a2 = params["gat_a"][h_dim:, :]            # (h, 1)
    lbl_a1 = params["label_a"][:class_num, :].T
    lbl_a2 = params["label_a"][class_num:, :]

    kernel = functools.partial(_fused_mentor_kernel, alpha=0.2)
    vmem_spec = pl.BlockSpec(memory_space=pltpu.MemorySpace.VMEM)

    # one fused, grid-less pallas_call: all operands + intermediates VMEM-resident
    label_prediction = pl.pallas_call(
        kernel,
        out_shape=jax.ShapeDtypeStruct((N_t, class_num), jnp.float32),
        in_specs=[vmem_spec] * 15,
        out_specs=vmem_spec,
    )(g_t_feats, g_t_adj, adj_bd, emb_off,
      params["gat_W"], gat_a1, gat_a2,
      params["dp_t"][0], dps0_stack, trans_w_bd, trans_b,
      lblw_top, lblw_bot, lbl_a1, lbl_a2)
    return 0.0, label_prediction


# ----------------------------------------------------------------------------
# deterministic setup
# ----------------------------------------------------------------------------
def _make_adj(key, n):
    a = jax.random.bernoulli(key, 0.3, (n, n)).astype(jnp.float32)
    adj = jnp.maximum(a, a.T)
    return jnp.maximum(adj, jnp.eye(n, dtype=jnp.float32))


if __name__ == "__main__":
    key = jax.random.PRNGKey(0)

    # small shapes consistent with the module
    num_graph = 2
    N_t, in_dim_t, h_dim, class_num = 32, 16, 8, 4     # h_dim = n_hid*n_head (n_head=1)
    super_node = [16, 8]
    N_s = [24, 28]

    ks = iter(jax.random.split(key, 64))
    u = lambda shape, s=0.2: jax.random.uniform(next(ks), shape, jnp.float32, -s, s)

    params = {
        # GAT_block (base model), one head: W (in_dim_t, h_dim), a (2*h_dim, 1)
        "gat_W": u((in_dim_t, h_dim)),
        "gat_a": u((2 * h_dim, 1)),
        # target diff-pool GraphConv weights (torch.rand -> uniform [0,1)), no bias
        "dp_t": [jax.random.uniform(next(ks), (h_dim, super_node[i]), jnp.float32)
                 for i in range(len(super_node))],
        # source diff-pool GraphConv weights
        "dp_s": [[jax.random.uniform(next(ks), (h_dim, super_node[j]), jnp.float32)
                  for j in range(len(super_node))] for _ in range(num_graph)],
        # s2t mapping blocks: Linear(h_dim, h_dim) + ReLU per pooling level
        "trans": [[(u((h_dim, h_dim)), u((1, h_dim))) for _ in range(len(super_node))]
                  for _ in range(num_graph)],
        # label_mlp = GraphAttentionLayer(h_dim*(num_graph+1) -> class_num, concat=False)
        "label_W": u((h_dim * (num_graph + 1), class_num)),
        "label_a": u((2 * class_num, 1)),
    }

    g_t_feats = jax.random.normal(next(ks), (N_t, in_dim_t), jnp.float32)
    g_t_adj = _make_adj(next(ks), N_t)
    g_s_adj = [_make_adj(next(ks), n) for n in N_s]
    emb_source = [jax.random.normal(next(ks), (n, h_dim), jnp.float32) for n in N_s]

    _, label_prediction = mentor_gnn_forward(params, g_s_adj, emb_source,
                                             g_t_feats, g_t_adj)
    label_prediction = jax.block_until_ready(label_prediction)
    assert label_prediction.shape == (N_t, class_num)
    assert bool(jnp.all(jnp.isfinite(label_prediction)))
    # output rows are an exact-divide softmax -> should sum to ~1
    assert bool(jnp.all(jnp.abs(jnp.sum(label_prediction, axis=1) - 1.0) < 1e-3))
    print("KERNEL_OK")
</pallas_src>

<mosaic_0001>
module attributes {stable_mosaic.version = 11 : i64} {
  func.func @_fused_mentor_kernel(%arg0: memref<32x16xf32, #tpu.memory_space<vmem>>, %arg1: memref<32x32xf32, #tpu.memory_space<vmem>>, %arg2: memref<64x64xf32, #tpu.memory_space<vmem>>, %arg3: memref<64x16xf32, #tpu.memory_space<vmem>>, %arg4: memref<16x8xf32, #tpu.memory_space<vmem>>, %arg5: memref<1x8xf32, #tpu.memory_space<vmem>>, %arg6: memref<8x1xf32, #tpu.memory_space<vmem>>, %arg7: memref<8x16xf32, #tpu.memory_space<vmem>>, %arg8: memref<16x16xf32, #tpu.memory_space<vmem>>, %arg9: memref<16x16xf32, #tpu.memory_space<vmem>>, %arg10: memref<1x16xf32, #tpu.memory_space<vmem>>, %arg11: memref<16x4xf32, #tpu.memory_space<vmem>>, %arg12: memref<8x4xf32, #tpu.memory_space<vmem>>, %arg13: memref<1x4xf32, #tpu.memory_space<vmem>>, %arg14: memref<4x1xf32, #tpu.memory_space<vmem>>, %arg15: memref<32x4xf32, #tpu.memory_space<vmem>>) attributes {dimension_semantics = [], scalar_prefetch = 0 : i64, scratch_operands = 0 : i64, tpu.core_type = #tpu.core_type<tc>} {
    %c0 = arith.constant 0 : index
    %c0_0 = arith.constant 0 : index
    %0 = vector.load %arg1[%c0, %c0_0] : memref<32x32xf32, #tpu.memory_space<vmem>>, vector<32x32xf32>
    %cst = arith.constant 0.000000e+00 : f32
    %1 = vector.broadcast %cst : f32 to vector<32x32xf32>
    %2 = arith.cmpf ogt, %0, %1 : vector<32x32xf32>
    %cst_1 = arith.constant 0.000000e+00 : f32
    %cst_2 = arith.constant -9.000000e+15 : f32
    %3 = vector.broadcast %cst_1 : f32 to vector<32x32xf32>
    %4 = vector.broadcast %cst_2 : f32 to vector<32x32xf32>
    %5 = arith.select %2, %3, %4 : vector<32x32xi1>, vector<32x32xf32>
    %c0_3 = arith.constant 0 : index
    %c0_4 = arith.constant 0 : index
    %6 = vector.load %arg0[%c0_3, %c0_4] : memref<32x16xf32, #tpu.memory_space<vmem>>, vector<32x16xf32>
    %c0_5 = arith.constant 0 : index
    %c0_6 = arith.constant 0 : index
    %7 = vector.load %arg4[%c0_5, %c0_6] : memref<16x8xf32, #tpu.memory_space<vmem>>, vector<16x8xf32>
    %8 = arith.truncf %6 : vector<32x16xf32> to vector<32x16xbf16>
    %9 = arith.truncf %7 : vector<16x8xf32> to vector<16x8xbf16>
    %cst_7 = arith.constant dense<0.000000e+00> : vector<32x8xf32>
    %10 = tpu.matmul %8, %9, %cst_7 {dimension_numbers = #tpu.dot_dimension_numbers<[1], [0], [0], [1], [0, 0, 1, 1], [], []>} : vector<32x16xbf16>, vector<16x8xbf16>, vector<32x8xf32> -> vector<32x8xf32>
    %c0_8 = arith.constant 0 : index
    %c0_9 = arith.constant 0 : index
    %11 = vector.load %arg5[%c0_8, %c0_9] : memref<1x8xf32, #tpu.memory_space<vmem>>, vector<1x8xf32>
    %c0_10 = arith.constant 0 : index
    %c0_11 = arith.constant 0 : index
    %12 = vector.load %arg6[%c0_10, %c0_11] : memref<8x1xf32, #tpu.memory_space<vmem>>, vector<8x1xf32>
    %13 = vector.broadcast %11 : vector<1x8xf32> to vector<32x8xf32>
    %14 = arith.mulf %10, %13 : vector<32x8xf32>
    %cst_12 = arith.constant dense<0.000000e+00> : vector<32xf32>
    %15 = vector.multi_reduction <add>, %14, %cst_12 [1] : vector<32x8xf32> to vector<32xf32>
    %16 = vector.shape_cast %15 : vector<32xf32> to vector<32x1xf32>
    %cst_13 = arith.constant dense<0.000000e+00> : vector<1x32xf32>
    %17 = tpu.matmul %12, %10, %cst_13 {dimension_numbers = #tpu.dot_dimension_numbers<[0], [1], [1], [0], [0, 1, 1, 0], [], []>} : vector<8x1xf32>, vector<32x8xf32>, vector<1x32xf32> -> vector<1x32xf32>
    %18 = vector.broadcast %16 : vector<32x1xf32> to vector<32x32xf32>
    %19 = vector.broadcast %17 : vector<1x32xf32> to vector<32x32xf32>
    %20 = arith.addf %18, %19 : vector<32x32xf32>
    %cst_14 = arith.constant 0.000000e+00 : f32
    %21 = vector.broadcast %cst_14 : f32 to vector<32x32xf32>
    %22 = arith.cmpf ogt, %20, %21 : vector<32x32xf32>
    %cst_15 = arith.constant 2.000000e-01 : f32
    %23 = vector.broadcast %cst_15 : f32 to vector<32x32xf32>
    %24 = arith.mulf %23, %20 : vector<32x32xf32>
    %25 = arith.select %22, %20, %24 : vector<32x32xi1>, vector<32x32xf32>
    %26 = arith.addf %25, %5 : vector<32x32xf32>
    %cst_16 = arith.constant dense<0xFF800000> : vector<32xf32>
    %27 = vector.multi_reduction <maximumf>, %26, %cst_16 [1] : vector<32x32xf32> to vector<32xf32>
    %28 = vector.shape_cast %27 : vector<32xf32> to vector<32x1xf32>
    %29 = vector.broadcast %28 : vector<32x1xf32> to vector<32x32xf32>
    %30 = arith.subf %26, %29 : vector<32x32xf32>
    %31 = math.exp %30 : vector<32x32xf32>
    %cst_17 = arith.constant dense<0.000000e+00> : vector<32xf32>
    %32 = vector.multi_reduction <add>, %31, %cst_17 [1] : vector<32x32xf32> to vector<32xf32>
    %33 = vector.shape_cast %32 : vector<32xf32> to vector<32x1xf32>
    %34 = tpu.reciprocal %33 {approx = true} : vector<32x1xf32> -> vector<32x1xf32>
    %35 = vector.broadcast %34 : vector<32x1xf32> to vector<32x32xf32>
    %36 = arith.mulf %31, %35 : vector<32x32xf32>
    %37 = arith.truncf %36 : vector<32x32xf32> to vector<32x32xbf16>
    %38 = arith.truncf %10 : vector<32x8xf32> to vector<32x8xbf16>
    %cst_18 = arith.constant dense<0.000000e+00> : vector<32x8xf32>
    %39 = tpu.matmul %37, %38, %cst_18 {dimension_numbers = #tpu.dot_dimension_numbers<[1], [0], [0], [1], [0, 0, 1, 1], [], []>} : vector<32x32xbf16>, vector<32x8xbf16>, vector<32x8xf32> -> vector<32x8xf32>
    %cst_19 = arith.constant 0.000000e+00 : f32
    %40 = vector.broadcast %cst_19 : f32 to vector<32x8xf32>
    %41 = arith.cmpf ogt, %39, %40 : vector<32x8xf32>
    %cst_20 = arith.constant 0.000000e+00 : f32
    %42 = vector.broadcast %cst_20 : f32 to vector<32x8xf32>
    %43 = arith.minimumf %39, %42 : vector<32x8xf32>
    %44 = math.exp %43 : vector<32x8xf32>
    %cst_21 = arith.constant 1.000000e+00 : f32
    %45 = vector.broadcast %cst_21 : f32 to vector<32x8xf32>
    %46 = arith.subf %44, %45 : vector<32x8xf32>
    %47 = arith.select %41, %39, %46 : vector<32x8xi1>, vector<32x8xf32>
    %c0_22 = arith.constant 0 : index
    %c0_23 = arith.constant 0 : index
    %48 = vector.load %arg3[%c0_22, %c0_23] : memref<64x16xf32, #tpu.memory_space<vmem>>, vector<64x16xf32>
    %c0_24 = arith.constant 0 : index
    %c0_25 = arith.constant 0 : index
    %49 = vector.load %arg2[%c0_24, %c0_25] : memref<64x64xf32, #tpu.memory_space<vmem>>, vector<64x64xf32>
    %c0_26 = arith.constant 0 : index
    %c0_27 = arith.constant 0 : index
    %50 = vector.load %arg8[%c0_26, %c0_27] : memref<16x16xf32, #tpu.memory_space<vmem>>, vector<16x16xf32>
    %51 = arith.truncf %49 : vector<64x64xf32> to vector<64x64xbf16>
    %52 = arith.truncf %48 : vector<64x16xf32> to vector<64x16xbf16>
    %cst_28 = arith.constant dense<0.000000e+00> : vector<64x16xf32>
    %53 = tpu.matmul %51, %52, %cst_28 {dimension_numbers = #tpu.dot_dimension_numbers<[1], [0], [0], [1], [0, 0, 1, 1], [], []>} : vector<64x64xbf16>, vector<64x16xbf16>, vector<64x16xf32> -> vector<64x16xf32>
    %54 = arith.truncf %53 : vector<64x16xf32> to vector<64x16xbf16>
    %55 = arith.truncf %50 : vector<16x16xf32> to vector<16x16xbf16>
    %cst_29 = arith.constant dense<0.000000e+00> : vector<64x16xf32>
    %56 = tpu.matmul %54, %55, %cst_29 {dimension_numbers = #tpu.dot_dimension_numbers<[1], [0], [0], [1], [0, 0, 1, 1], [], []>} : vector<64x16xbf16>, vector<16x16xbf16>, vector<64x16xf32> -> vector<64x16xf32>
    %57 = arith.mulf %56, %56 : vector<64x16xf32>
    %cst_30 = arith.constant dense<0.000000e+00> : vector<64xf32>
    %58 = vector.multi_reduction <add>, %57, %cst_30 [1] : vector<64x16xf32> to vector<64xf32>
    %59 = vector.shape_cast %58 : vector<64xf32> to vector<64x1xf32>
    %60 = math.sqrt %59 : vector<64x1xf32>
    %cst_31 = arith.constant 9.99999996E-13 : f32
    %61 = vector.broadcast %cst_31 : f32 to vector<64x1xf32>
    %62 = arith.maximumf %60, %61 : vector<64x1xf32>
    %63 = vector.broadcast %62 : vector<64x1xf32> to vector<64x16xf32>
    %64 = arith.divf %56, %63 : vector<64x16xf32>
    %cst_32 = arith.constant dense<0xFF800000> : vector<64xf32>
    %65 = vector.multi_reduction <maximumf>, %64, %cst_32 [1] : vector<64x16xf32> to vector<64xf32>
    %66 = vector.shape_cast %65 : vector<64xf32> to vector<64x1xf32>
    %67 = vector.broadcast %66 : vector<64x1xf32> to vector<64x16xf32>
    %68 = arith.subf %64, %67 : vector<64x16xf32>
    %69 = math.exp %68 : vector<64x16xf32>
    %cst_33 = arith.constant dense<0.000000e+00> : vector<64xf32>
    %70 = vector.multi_reduction <add>, %69, %cst_33 [1] : vector<64x16xf32> to vector<64xf32>
    %71 = vector.shape_cast %70 : vector<64xf32> to vector<64x1xf32>
    %72 = tpu.reciprocal %71 {approx = true} : vector<64x1xf32> -> vector<64x1xf32>
    %73 = vector.broadcast %72 : vector<64x1xf32> to vector<64x16xf32>
    %74 = arith.mulf %69, %73 : vector<64x16xf32>
    %cst_34 = arith.constant dense<0.000000e+00> : vector<16x16xf32>
    %75 = tpu.matmul %74, %48, %cst_34 {dimension_numbers = #tpu.dot_dimension_numbers<[0], [0], [1], [1], [0, 1, 1, 1], [], []>} : vector<64x16xf32>, vector<64x16xf32>, vector<16x16xf32> -> vector<16x16xf32>
    %c0_35 = arith.constant 0 : index
    %c0_36 = arith.constant 0 : index
    %76 = vector.load %arg9[%c0_35, %c0_36] : memref<16x16xf32, #tpu.memory_space<vmem>>, vector<16x16xf32>
    %77 = arith.truncf %75 : vector<16x16xf32> to vector<16x16xbf16>
    %78 = arith.truncf %76 : vector<16x16xf32> to vector<16x16xbf16>
    %cst_37 = arith.constant dense<0.000000e+00> : vector<16x16xf32>
    %79 = tpu.matmul %77, %78, %cst_37 {dimension_numbers = #tpu.dot_dimension_numbers<[1], [0], [0], [1], [0, 0, 1, 1], [], []>} : vector<16x16xbf16>, vector<16x16xbf16>, vector<16x16xf32> -> vector<16x16xf32>
    %c0_38 = arith.constant 0 : index
    %c0_39 = arith.constant 0 : index
    %80 = vector.load %arg10[%c0_38, %c0_39] : memref<1x16xf32, #tpu.memory_space<vmem>>, vector<1x16xf32>
    %81 = vector.broadcast %80 : vector<1x16xf32> to vector<16x16xf32>
    %82 = arith.addf %79, %81 : vector<16x16xf32>
    %cst_40 = arith.constant 0.000000e+00 : f32
    %83 = vector.broadcast %cst_40 : f32 to vector<16x16xf32>
    %84 = arith.maximumf %82, %83 : vector<16x16xf32>
    %c0_41 = arith.constant 0 : index
    %c0_42 = arith.constant 0 : index
    %85 = vector.load %arg7[%c0_41, %c0_42] : memref<8x16xf32, #tpu.memory_space<vmem>>, vector<8x16xf32>
    %86 = arith.truncf %0 : vector<32x32xf32> to vector<32x32xbf16>
    %87 = arith.truncf %47 : vector<32x8xf32> to vector<32x8xbf16>
    %cst_43 = arith.constant dense<0.000000e+00> : vector<32x8xf32>
    %88 = tpu.matmul %86, %87, %cst_43 {dimension_numbers = #tpu.dot_dimension_numbers<[1], [0], [0], [1], [0, 0, 1, 1], [], []>} : vector<32x32xbf16>, vector<32x8xbf16>, vector<32x8xf32> -> vector<32x8xf32>
    %89 = arith.truncf %88 : vector<32x8xf32> to vector<32x8xbf16>
    %90 = arith.truncf %85 : vector<8x16xf32> to vector<8x16xbf16>
    %cst_44 = arith.constant dense<0.000000e+00> : vector<32x16xf32>
    %91 = tpu.matmul %89, %90, %cst_44 {dimension_numbers = #tpu.dot_dimension_numbers<[1], [0], [0], [1], [0, 0, 1, 1], [], []>} : vector<32x8xbf16>, vector<8x16xbf16>, vector<32x16xf32> -> vector<32x16xf32>
    %92 = arith.mulf %91, %91 : vector<32x16xf32>
    %cst_45 = arith.constant dense<0.000000e+00> : vector<32xf32>
    %93 = vector.multi_reduction <add>, %92, %cst_45 [1] : vector<32x16xf32> to vector<32xf32>
    %94 = vector.shape_cast %93 : vector<32xf32> to vector<32x1xf32>
    %95 = math.sqrt %94 : vector<32x1xf32>
    %cst_46 = arith.constant 9.99999996E-13 : f32
    %96 = vector.broadcast %cst_46 : f32 to vector<32x1xf32>
    %97 = arith.maximumf %95, %96 : vector<32x1xf32>
    %98 = vector.broadcast %97 : vector<32x1xf32> to vector<32x16xf32>
    %99 = arith.divf %91, %98 : vector<32x16xf32>
    %cst_47 = arith.constant dense<0xFF800000> : vector<32xf32>
    %100 = vector.multi_reduction <maximumf>, %99, %cst_47 [1] : vector<32x16xf32> to vector<32xf32>
    %101 = vector.shape_cast %100 : vector<32xf32> to vector<32x1xf32>
    %102 = vector.broadcast %101 : vector<32x1xf32> to vector<32x16xf32>
    %103 = arith.subf %99, %102 : vector<32x16xf32>
    %104 = math.exp %103 : vector<32x16xf32>
    %cst_48 = arith.constant dense<0.000000e+00> : vector<32xf32>
    %105 = vector.multi_reduction <add>, %104, %cst_48 [1] : vector<32x16xf32> to vector<32xf32>
    %106 = vector.shape_cast %105 : vector<32xf32> to vector<32x1xf32>
    %107 = tpu.reciprocal %106 {approx = true} : vector<32x1xf32> -> vector<32x1xf32>
    %108 = vector.broadcast %107 : vector<32x1xf32> to vector<32x16xf32>
    %109 = arith.mulf %104, %108 : vector<32x16xf32>
    %c0_49 = arith.constant 0 : index
    %c0_50 = arith.constant 0 : index
    %110 = vector.load %arg11[%c0_49, %c0_50] : memref<16x4xf32, #tpu.memory_space<vmem>>, vector<16x4xf32>
    %111 = arith.truncf %84 : vector<16x16xf32> to vector<16x16xbf16>
    %112 = arith.truncf %110 : vector<16x4xf32> to vector<16x4xbf16>
    %cst_51 = arith.constant dense<0.000000e+00> : vector<16x4xf32>
    %113 = tpu.matmul %111, %112, %cst_51 {dimension_numbers = #tpu.dot_dimension_numbers<[1], [0], [0], [1], [0, 0, 1, 1], [], []>} : vector<16x16xbf16>, vector<16x4xbf16>, vector<16x4xf32> -> vector<16x4xf32>
    %114 = arith.truncf %109 : vector<32x16xf32> to vector<32x16xbf16>
    %115 = arith.truncf %113 : vector<16x4xf32> to vector<16x4xbf16>
    %cst_52 = arith.constant dense<0.000000e+00> : vector<32x4xf32>
    %116 = tpu.matmul %114, %115, %cst_52 {dimension_numbers = #tpu.dot_dimension_numbers<[1], [0], [0], [1], [0, 0, 1, 1], [], []>} : vector<32x16xbf16>, vector<16x4xbf16>, vector<32x4xf32> -> vector<32x4xf32>
    %c0_53 = arith.constant 0 : index
    %c0_54 = arith.constant 0 : index
    %117 = vector.load %arg12[%c0_53, %c0_54] : memref<8x4xf32, #tpu.memory_space<vmem>>, vector<8x4xf32>
    %118 = arith.truncf %47 : vector<32x8xf32> to vector<32x8xbf16>
    %119 = arith.truncf %117 : vector<8x4xf32> to vector<8x4xbf16>
    %cst_55 = arith.constant dense<0.000000e+00> : vector<32x4xf32>
    %120 = tpu.matmul %118, %119, %cst_55 {dimension_numbers = #tpu.dot_dimension_numbers<[1], [0], [0], [1], [0, 0, 1, 1], [], []>} : vector<32x8xbf16>, vector<8x4xbf16>, vector<32x4xf32> -> vector<32x4xf32>
    %121 = arith.addf %116, %120 : vector<32x4xf32>
    %c0_56 = arith.constant 0 : index
    %c0_57 = arith.constant 0 : index
    %122 = vector.load %arg13[%c0_56, %c0_57] : memref<1x4xf32, #tpu.memory_space<vmem>>, vector<1x4xf32>
    %c0_58 = arith.constant 0 : index
    %c0_59 = arith.constant 0 : index
    %123 = vector.load %arg14[%c0_58, %c0_59] : memref<4x1xf32, #tpu.memory_space<vmem>>, vector<4x1xf32>
    %124 = vector.broadcast %122 : vector<1x4xf32> to vector<32x4xf32>
    %125 = arith.mulf %121, %124 : vector<32x4xf32>
    %cst_60 = arith.constant dense<0.000000e+00> : vector<32xf32>
    %126 = vector.multi_reduction <add>, %125, %cst_60 [1] : vector<32x4xf32> to vector<32xf32>
    %127 = vector.shape_cast %126 : vector<32xf32> to vector<32x1xf32>
    %cst_61 = arith.constant dense<0.000000e+00> : vector<1x32xf32>
    %128 = tpu.matmul %123, %121, %cst_61 {dimension_numbers = #tpu.dot_dimension_numbers<[0], [1], [1], [0], [0, 1, 1, 0], [], []>} : vector<4x1xf32>, vector<32x4xf32>, vector<1x32xf32> -> vector<1x32xf32>
    %129 = vector.broadcast %127 : vector<32x1xf32> to vector<32x32xf32>
    %130 = vector.broadcast %128 : vector<1x32xf32> to vector<32x32xf32>
    %131 = arith.addf %129, %130 : vector<32x32xf32>
    %cst_62 = arith.constant 0.000000e+00 : f32
    %132 = vector.broadcast %cst_62 : f32 to vector<32x32xf32>
    %133 = arith.cmpf ogt, %131, %132 : vector<32x32xf32>
    %cst_63 = arith.constant 2.000000e-01 : f32
    %134 = vector.broadcast %cst_63 : f32 to vector<32x32xf32>
    %135 = arith.mulf %134, %131 : vector<32x32xf32>
    %136 = arith.select %133, %131, %135 : vector<32x32xi1>, vector<32x32xf32>
    %137 = arith.addf %136, %5 : vector<32x32xf32>
    %cst_64 = arith.constant dense<0xFF800000> : vector<32xf32>
    %138 = vector.multi_reduction <maximumf>, %137, %cst_64 [1] : vector<32x32xf32> to vector<32xf32>
    %139 = vector.shape_cast %138 : vector<32xf32> to vector<32x1xf32>
    %140 = vector.broadcast %139 : vector<32x1xf32> to vector<32x32xf32>
    %141 = arith.subf %137, %140 : vector<32x32xf32>
    %142 = math.exp %141 : vector<32x32xf32>
    %cst_65 = arith.constant dense<0.000000e+00> : vector<32xf32>
    %143 = vector.multi_reduction <add>, %142, %cst_65 [1] : vector<32x32xf32> to vector<32xf32>
    %144 = vector.shape_cast %143 : vector<32xf32> to vector<32x1xf32>
    %145 = tpu.reciprocal %144 {approx = true} : vector<32x1xf32> -> vector<32x1xf32>
    %146 = vector.broadcast %145 : vector<32x1xf32> to vector<32x32xf32>
    %147 = arith.mulf %142, %146 : vector<32x32xf32>
    %148 = arith.truncf %147 : vector<32x32xf32> to vector<32x32xbf16>
    %149 = arith.truncf %121 : vector<32x4xf32> to vector<32x4xbf16>
    %cst_66 = arith.constant dense<0.000000e+00> : vector<32x4xf32>
    %150 = tpu.matmul %148, %149, %cst_66 {dimension_numbers = #tpu.dot_dimension_numbers<[1], [0], [0], [1], [0, 0, 1, 1], [], []>} : vector<32x32xbf16>, vector<32x4xbf16>, vector<32x4xf32> -> vector<32x4xf32>
    %cst_67 = arith.constant 0.000000e+00 : f32
    %151 = vector.broadcast %cst_67 : f32 to vector<32x4xf32>
    %152 = arith.cmpf ogt, %150, %151 : vector<32x4xf32>
    %cst_68 = arith.constant 0.000000e+00 : f32
    %153 = vector.broadcast %cst_68 : f32 to vector<32x4xf32>
    %154 = arith.minimumf %150, %153 : vector<32x4xf32>
    %155 = math.exp %154 : vector<32x4xf32>
    %cst_69 = arith.constant 1.000000e+00 : f32
    %156 = vector.broadcast %cst_69 : f32 to vector<32x4xf32>
    %157 = arith.subf %155, %156 : vector<32x4xf32>
    %158 = arith.select %152, %150, %157 : vector<32x4xi1>, vector<32x4xf32>
    %cst_70 = arith.constant dense<0xFF800000> : vector<32xf32>
    %159 = vector.multi_reduction <maximumf>, %158, %cst_70 [1] : vector<32x4xf32> to vector<32xf32>
    %160 = vector.shape_cast %159 : vector<32xf32> to vector<32x1xf32>
    %161 = vector.broadcast %160 : vector<32x1xf32> to vector<32x4xf32>
    %162 = arith.subf %158, %161 : vector<32x4xf32>
    %163 = math.exp %162 : vector<32x4xf32>
    %cst_71 = arith.constant dense<0.000000e+00> : vector<32xf32>
    %164 = vector.multi_reduction <add>, %163, %cst_71 [1] : vector<32x4xf32> to vector<32xf32>
    %165 = vector.shape_cast %164 : vector<32xf32> to vector<32x1xf32>
    %166 = vector.broadcast %165 : vector<32x1xf32> to vector<32x4xf32>
    %167 = arith.divf %163, %166 : vector<32x4xf32>
    %c0_72 = arith.constant 0 : index
    %c0_73 = arith.constant 0 : index
    %168 = vector.load %arg15[%c0_72, %c0_73] : memref<32x4xf32, #tpu.memory_space<vmem>>, vector<32x4xf32>
    tpu.vector_store %arg15[%c0_72, %c0_73], %167 {strides = array<i32>} : memref<32x4xf32, #tpu.memory_space<vmem>>, vector<32x4xf32>,
    return
  }
}

</mosaic_0001>

<bundles_post_ra>
// kernel: tpu_custom_call.1
= control target key start
LH: loop header
LB: loop body
LE: loop exit
PB: predicated region body
PF: predicated region fallthrough
CT: control target
= control target key end

     0   :  { %vm72_vm0 = vcmask 130048   ;;  %vm107_vm1 = vcmask 64512   ;;  %v1689_v32 = vmov -9e+15   ;;  %vm208_vm6 = vcmask 261120   ;;  %s2273_s4 = inlined_call_operand.vmem [shape: f32[16,8], index: 4, kind: input, shape index: {}]   ;;  %s2274_s6 = inlined_call_operand.vmem [shape: f32[8,1], index: 6, kind: input, shape index: {}]   ;;  %s2275_s0 = inlined_call_operand.vmem [shape: f32[32,16], index: 0, kind: input, shape index: {}]   ;;  %s2276_s5 = inlined_call_operand.vmem [shape: f32[1,8], index: 5, kind: input, shape index: {}]   ;;  %s2277_s1 = inlined_call_operand.vmem [shape: f32[32,32], index: 1, kind: input, shape index: {}]   ;;  %s2278_s3 = inlined_call_operand.vmem [shape: f32[64,16], index: 3, kind: input, shape index: {}]   ;;  %s2279_s2 = inlined_call_operand.vmem [shape: f32[64,64], index: 2, kind: input, shape index: {}]   ;;  %s2280_s8 = inlined_call_operand.vmem [shape: f32[16,16], index: 8, kind: input, shape index: {}]   ;;  %s2281_s12 = inlined_call_operand.vmem [shape: f32[8,4], index: 12, kind: input, shape index: {}]   ;;  %s2282_s10 = inlined_call_operand.vmem [shape: f32[1,16], index: 10, kind: input, shape index: {}]   ;;  %s2283_s9 = inlined_call_operand.vmem [shape: f32[16,16], index: 9, kind: input, shape index: {}]   ;;  %s2284_s7 = inlined_call_operand.vmem [shape: f32[8,16], index: 7, kind: input, shape index: {}]   ;;  %s2285_s11 = inlined_call_operand.vmem [shape: f32[16,4], index: 11, kind: input, shape index: {}]   ;;  %s2286_s14 = inlined_call_operand.vmem [shape: f32[4,1], index: 14, kind: input, shape index: {}]   ;;  %s2287_s13 = inlined_call_operand.vmem [shape: f32[1,4], index: 13, kind: input, shape index: {}]   ;;  %s2288_s15 = inlined_call_operand.vmem [shape: f32[32,4], index: 15, kind: output, shape index: {}]  }
   0x1   :  { %v67_v0 = vld [vmem:[%s2273_s4] sm:$0xff]  ;;  %v68_v1 = vld [vmem:[%s2273_s4 + $0x8] sm:$0xff]  ;;  %v65_v7 = vld [vmem:[%s2275_s0 + $0x10] sm:$0xff]  ;;  %vm332_vm11 = vcmask 523264  }
   0x2   :  { %v99_v2 = vld [vmem:[%s2274_s6] sm:$0xff]  ;;  %v71_v3 = vpack.c.bf16 %v68_v1, %v67_v0  ;;  %v64_v5 = vld [vmem:[%s2275_s0 + $0x8] sm:$0xff]  ;;  %v66_v8 = vld [vmem:[%s2275_s0 + $0x18] sm:$0xff] }
   0x3   :  { %120 = vxpose.xlu0.b32.start.end [1/1] (short) (narrow) %v99_v2, 8  ;;  %v63_v4 = vld [vmem:[%s2275_s0] sm:$0xff]  ;;  %v70_v9 = vpack.c.bf16 %v66_v8, %v65_v7  ;;  %v53_v24 = vld [vmem:[%s2277_s1 + $0x10] sm:$0xff]  ;;  %v54_v25 = vld [vmem:[%s2277_s1 + $0x18] sm:$0xff] }
   0x4   :  { %v69_v6 = vpack.c.bf16 %v64_v5, %v63_v4  ;;  %86 = vmatpush.bf16.msra.mxu0 %v71_v3  ;;  %v1524_v10 = vld [vmem:[%s2276_s5] ss:$0 sm:$0xff]  ;;  %vm57_vm2 = vcmp.gt.f32.partialorder %v53_v24, 0.0  ;;  %vm58_vm3 = vcmp.gt.f32.partialorder %v54_v25, 0.0  ;;  %v312_v55 = vld [vmem:[%s2278_s3 + $0x30] sm:$0xff]  ;;  %v313_v56 = vld [vmem:[%s2278_s3 + $0x38] sm:$0xff] }
   0x5   :  { %v1818_v33 = vsel %vm57_vm2, 0.0, %v1689_v32  ;;  %v1821_v34 = vsel %vm58_vm3, 0.0, %v1689_v32  ;;  %v331_v57 = vpack.c.bf16 %v313_v56, %v312_v55  ;;  %v310_v58 = vld [vmem:[%s2278_s3 + $0x20] sm:$0xff]  ;;  %v311_v59 = vld [vmem:[%s2278_s3 + $0x28] sm:$0xff]  ;;  %v308_v0 = vld [vmem:[%s2278_s3 + $0x10] sm:$0xff] }
   0x6   :  { %v330_v60 = vpack.c.bf16 %v311_v59, %v310_v58  ;;  %v1848_v61 = vld [vmem:[%s2277_s1] sm:$0xff]  ;;  %v1853_v62 = vld [vmem:[%s2277_s1 + $0x8] sm:$0xff]  ;;  %v309_v1 = vld [vmem:[%s2278_s3 + $0x18] sm:$0xff] }
   0x7   :  { %1476 = vmatmul.msk.bf16.vlgmr.msra.gmra.mxu0 %vm72_vm0, %v69_v6  ;;  %v853_v63 = vpack.c.bf16 %v1853_v62, %v1848_v61  ;;  %v329_v2 = vpack.c.bf16 %v309_v1, %v308_v0  ;;  %v306_v3 = vld [vmem:[%s2278_s3] sm:$0xff]  ;;  %v307_v4 = vld [vmem:[%s2278_s3 + $0x8] sm:$0xff]  ;;  %vm56_vm7 = vcmp.gt.f32.partialorder %v1853_v62, 0.0  ;;  %vm55_vm8 = vcmp.gt.f32.partialorder %v1848_v61, 0.0 }
   0x8   :  { %810 = vmatpush.msrb.mxu0 %v313_v56  ;;  %v328_v5 = vpack.c.bf16 %v307_v4, %v306_v3  ;;  %v825_v61 = vld [vmem:[%s2283_s9] sm:$0xff]  ;;  %v826_v62 = vld [vmem:[%s2283_s9 + $0x8] sm:$0xff] }
   0xa   :  { %811 = vmatpush.msrb.mxu0 %v312_v55 }
   0xc   :  { %812 = vmatpush.msrb.mxu0 %v311_v59 }
   0xe   :  { %813 = vmatpush.msrb.mxu0 %v310_v58 }
  0x10   :  { %814 = vmatpush.msrb.mxu0 %v309_v1 }
  0x12   :  { %815 = vmatpush.msrb.mxu0 %v308_v0 }
  0x14   :  { %816 = vmatpush.msrb.mxu0 %v307_v4 }
  0x16   :  { %817 = vmatpush.msrb.mxu0 %v306_v3 }
  0x17   :  { %1477 = vmatmul.msk.bf16.gmra.mxu0 %vm72_vm0, %v70_v9 }
  0x84   :  { %v88_v11 = vpop.f32.mrf.mxu0 }
  0x85   :  { %v1796_v12 = vmul.f32 %v1524_v10, %v88_v11 }
  0x87   :  { %v108_v54 = vsel %vm107_vm1, %v1796_v12, 0.0 }
  0x8c   :  { %v90_v13 = vpop.f32.mrf.mxu0 }
  0x8d   :  { %v1798_v14 = vmul.f32 %v1524_v10, %v90_v13  ;;  %v255_v22 = vpack.c.bf16 %v90_v13, %v88_v11 }
  0x8f   :  { %v111_v53 = vsel %vm107_vm1, %v1798_v14, 0.0 }
  0x94   :  { %v93_v15 = vpop.f32.mrf.mxu0 }
  0x95   :  { %v105_v16 = vmul.f32 %v1524_v10, %v93_v15 }
  0x97   :  { %v114_v17 = vsel %vm107_vm1, %v105_v16, 0.0 }
  0x98   :  { %115 = vadd.xlane.f32.xlu0 %v114_v17 }
  0x9c   :  { %v95_v18 = vpop.f32.mrf.mxu0 }
  0x9d   :  { %1478 = vmatpush.xpose.msk.msra.mxu1 %vm107_vm1, %v95_v18  ;;  %v256_v19 = vpack.c.bf16 %v95_v18, %v93_v15  ;;  %v106_v20 = vmul.f32 %v1524_v10, %v95_v18  ;;  %v1874_v18 = vsel %vm56_vm7, 0.0, %v1689_v32 }
  0x9f   :  { %269 = vmatpush.bf16.msra.mxu2 %v256_v19  ;;  %1520 = vmatpush.bf16.msra.mxu3 %v256_v19  ;;  %v117_v21 = vsel %vm107_vm1, %v106_v20, 0.0  ;;  %v1877_v20 = vsel %vm55_vm8, 0.0, %v1689_v32 }
  0xa0   :  { %118 = vadd.xlane.f32.xlu1 %v117_v21 }
  0xa1   :  { %1479 = vmatpush.xpose.msk.msra.mxu1 %vm107_vm1, %v93_v15 }
  0xa3   :  { %270 = vmatpush.bf16.msra.mxu2 %v255_v22  ;;  %1521 = vmatpush.bf16.msra.mxu3 %v255_v22 }
  0xa5   :  { %1480 = vmatpush.xpose.msk.msra.mxu1 %vm107_vm1, %v90_v13 }
  0xa7   :  { %v136_v23 = vpop.trf.xlu0  ;;  %349 = vmatpush.bf16.msrb.mxu3 %v331_v57 }
  0xa9   :  { %1481 = vmatpush.xpose.msk.msra.mxu1 %vm107_vm1, %v88_v11 }
  0xab   :  { %350 = vmatpush.bf16.msrb.mxu3 %v330_v60 }
  0xac   :  { %1482 = vmatmul.msk.f32.vlgmr.msra.gmra.mxu1 %vm107_vm1, %v136_v23 }
  0xaf   :  { %351 = vmatpush.bf16.msrb.mxu3 %v329_v2 }
  0xb3   :  { %352 = vmatpush.bf16.msrb.mxu3 %v328_v5 }
 0x10b   :  { %v116_v28 = vpop.xlane.xlu0 %115 }
 0x113   :  { %v119_v29 = vpop.xlane.xlu1 %118 }
 0x129   :  { %v184_v26 = vpop.f32.mrf.mxu1 }
 0x12a   :  { %v1813_v27 = vperm.slane %v184_v26, 0 }
 0x12c   :  { %v190_v30 = vadd.f32 %v1813_v27, %v116_v28  ;;  %v191_v31 = vadd.f32 %v1813_v27, %v119_v29  ;;  %v315_v28 = vld [vmem:[%s2279_s2 + $0x8] sm:$0xff] }
 0x12e   :  { %vm194_vm4 = vcmp.gt.f32.partialorder %v190_v30, 0.0  ;;  %v198_v35 = vmul.f32 0.2, %v190_v30  ;;  %vm195_vm5 = vcmp.gt.f32.partialorder %v191_v31, 0.0  ;;  %v199_v36 = vmul.f32 0.2, %v191_v31 }
 0x130   :  { %v202_v37 = vsel %vm194_vm4, %v190_v30, %v198_v35  ;;  %v203_v38 = vsel %vm195_vm5, %v191_v31, %v199_v36  ;;  %v316_v30 = vld [vmem:[%s2279_s2 + $0x10] sm:$0xff]  ;;  %v317_v31 = vld [vmem:[%s2279_s2 + $0x18] sm:$0xff]  ;;  %v318_v35 = vld [vmem:[%s2279_s2 + $0x20] sm:$0xff] }
 0x131   :  { %v206_v39 = vadd.f32 %v202_v37, %v1818_v33  ;;  %v207_v40 = vadd.f32 %v203_v38, %v1821_v34  ;;  %v325_v32 = vpack.c.bf16 %v317_v31, %v316_v30  ;;  %v319_v36 = vld [vmem:[%s2279_s2 + $0x28] sm:$0xff]  ;;  %v320_v38 = vld [vmem:[%s2279_s2 + $0x30] sm:$0xff] }
 0x132   :  { %v326_v37 = vpack.c.bf16 %v319_v36, %v318_v35 }
 0x133   :  { %v215_v41 = vsel %vm208_vm6, %v206_v39, -inf  ;;  %v218_v42 = vsel %vm208_vm6, %v207_v40, -inf }
 0x134   :  { %216 = vmax.xlane.f32.xlu1 %v215_v41  ;;  %219 = vmax.xlane.f32.xlu2 %v218_v42  ;;  %v322_v41 = vld [vmem:[%s2280_s8] sm:$0xff]  ;;  %v323_v42 = vld [vmem:[%s2280_s8 + $0x8] sm:$0xff] }
 0x1a7   :  { %v220_v43 = vpop.xlane.xlu2 %219  ;;  %v217_v44 = vpop.xlane.xlu1 %216 }
 0x1a8   :  { %v224_v45 = vsub.f32 %v207_v40, %v220_v43  ;;  %v223_v46 = vsub.f32 %v206_v39, %v217_v44  ;;  %v321_v39 = vld [vmem:[%s2279_s2 + $0x38] sm:$0xff]  ;;  %v378_v43 = vpack.c.bf16 %v323_v42, %v322_v41 }
 0x1a9   :  { %v327_v40 = vpack.c.bf16 %v321_v39, %v320_v38 }
 0x1aa   :  { %v231_v47 = vmul.f32 1.442695, %v224_v45  ;;  %v229_v48 = vmul.f32 1.442695, %v223_v46  ;;  %398 = vmatpush.bf16.msrb.mxu1 %v378_v43 }
 0x1ac   :  { %1527 = vpow2.f32 %v231_v47 }
 0x1ad   :  { %1529 = vpow2.f32 %v229_v48 }
 0x1b2   :  { %v1528_v49 = vpop.eup %1527 }
 0x1b3   :  { %v1530_v50 = vpop.eup %1529  ;;  %v242_v51 = vsel %vm208_vm6, %v1528_v49, 0.0 }
 0x1b4   :  { %243 = vadd.xlane.f32.xlu1 %v242_v51  ;;  %v239_v52 = vsel %vm208_vm6, %v1530_v50, 0.0 }
 0x1b5   :  { %240 = vadd.xlane.f32.xlu2 %v239_v52 }
 0x1bc   :  { %112 = vadd.xlane.f32.xlu1 %v111_v53 }
 0x1bd   :  { %109 = vadd.xlane.f32.xlu2 %v108_v54 }
 0x227   :  { %v244_v6 = vpop.xlane.xlu1 %243 }
 0x228   :  { %v241_v7 = vpop.xlane.xlu2 %240  ;;  %1531 = vrcp.f32 %v244_v6 }
 0x229   :  { %1533 = vrcp.f32 %v241_v7 }
 0x22e   :  { %v1532_v8 = vpop.eup %1531 }
 0x22f   :  { %v1534_v9 = vpop.eup %1533  ;;  %v113_v10 = vpop.xlane.xlu1 %112  ;;  %v252_v11 = vmul.f32 %v1532_v8, %v1528_v49 }
 0x230   :  { %v110_v12 = vpop.xlane.xlu2 %109  ;;  %v189_v13 = vadd.f32 %v1813_v27, %v113_v10  ;;  %v251_v14 = vmul.f32 %v1534_v9, %v1530_v50 }
 0x231   :  { %v188_v15 = vadd.f32 %v1813_v27, %v110_v12  ;;  %v314_v27 = vld [vmem:[%s2279_s2] sm:$0xff] }
 0x232   :  { %vm193_vm9 = vcmp.gt.f32.partialorder %v189_v13, 0.0  ;;  %v197_v16 = vmul.f32 0.2, %v189_v13  ;;  %v254_v17 = vpack.c.bf16 %v252_v11, %v251_v14  ;;  %v324_v29 = vpack.c.bf16 %v315_v28, %v314_v27 }
 0x233   :  { %vm192_vm10 = vcmp.gt.f32.partialorder %v188_v15, 0.0  ;;  %v196_v19 = vmul.f32 0.2, %v188_v15 }
 0x234   :  { %1484 = vmatmul.msk.bf16.vlgmr.msra.gmra.mxu3 %vm208_vm6, %v254_v17  ;;  %v201_v21 = vsel %vm193_vm9, %v189_v13, %v197_v16 }
 0x235   :  { %v200_v22 = vsel %vm192_vm10, %v188_v15, %v196_v19  ;;  %v1881_v23 = vadd.f32 %v201_v21, %v1874_v18 }
 0x236   :  { %v1884_v24 = vadd.f32 %v200_v22, %v1877_v20 }
 0x237   :  { %v212_v25 = vsel %vm208_vm6, %v1881_v23, -inf }
 0x238   :  { %v209_v26 = vsel %vm208_vm6, %v1884_v24, -inf  ;;  %213 = vmax.xlane.f32.xlu1 %v212_v25 }
 0x239   :  { %210 = vmax.xlane.f32.xlu2 %v209_v26 }
 0x244   :  { %1489 = vmatmul.msk.bf16.vlgmr.msrb.gmra.mxu3 %vm332_vm11, %v324_v29 }
 0x254   :  { %1490 = vmatmul.msk.bf16.gmra.mxu3 %vm332_vm11, %v325_v32 }
 0x264   :  { %1491 = vmatmul.msk.bf16.gmra.mxu3 %vm332_vm11, %v326_v37 }
 0x274   :  { %1492 = vmatmul.msk.bf16.gmra.mxu3 %vm332_vm11, %v327_v40 }
 0x2ab   :  { %v214_v35 = vpop.xlane.xlu1 %213 }
 0x2ac   :  { %v211_v27 = vpop.xlane.xlu2 %210  ;;  %v222_v38 = vsub.f32 %v1881_v23, %v214_v35 }
 0x2ad   :  { %v221_v30 = vsub.f32 %v1884_v24, %v211_v27 }
 0x2ae   :  { %v227_v40 = vmul.f32 1.442695, %v222_v38 }
 0x2af   :  { %v225_v32 = vmul.f32 1.442695, %v221_v30 }
 0x2b7   :  { %v277_v44 = vpop.f32.mrf.mxu3 }
 0x2b8   :  { %v288_v45 = vmin.f32 %v277_v44, 0.0  ;;  %vm284_vm12 = vcmp.gt.f32.partialorder %v277_v44, 0.0 }
 0x2ba   :  { %v294_v46 = vmul.f32 1.442695, %v288_v45 }
 0x2bc   :  { %1535 = vpow2.f32 %v294_v46 }
 0x2bf   :  { %v279_v47 = vpop.f32.mrf.mxu3 }
 0x2c0   :  { %v289_v48 = vmin.f32 %v279_v47, 0.0  ;;  %vm285_vm13 = vcmp.gt.f32.partialorder %v279_v47, 0.0 }
 0x2c2   :  { %v296_v49 = vmul.f32 1.442695, %v289_v48  ;;  %v1536_v50 = vpop.eup %1535 }
 0x2c3   :  { %v1487_v52 = vadd.f32 -1.0, %v1536_v50 }
 0x2c4   :  { %1537 = vpow2.f32 %v296_v49 }
 0x2c5   :  { %v304_v55 = vsel %vm284_vm12, %v277_v44, %v1487_v52  ;;  %1539 = vpow2.f32 %v225_v32 }
 0x2c6   :  { %1541 = vpow2.f32 %v227_v40 }
 0x2c7   :  { %v354_v51 = vpop.f32.mrf.mxu3 }
 0x2ca   :  { %v1538_v53 = vpop.eup %1537 }
 0x2cb   :  { %v1488_v54 = vadd.f32 -1.0, %v1538_v53  ;;  %v1968_v41 = vpop.eup %1539 }
 0x2cc   :  { %v233_v43 = vsel %vm208_vm6, %v1968_v41, 0.0  ;;  %v1977_v23 = vpop.eup %1541 }
 0x2cd   :  { %v305_v56 = vsel %vm285_vm13, %v279_v47, %v1488_v54  ;;  %v236_v45 = vsel %vm208_vm6, %v1977_v23, 0.0 }
 0x2ce   :  { %v1924_v57 = vpack.c.bf16 %v305_v56, %v304_v55 }
 0x2cf   :  { %v356_v58 = vpop.f32.mrf.mxu3 }
 0x2d0   :  { %v374_v59 = vpack.c.bf16 %v356_v58, %v354_v51  ;;  %869 = vmatpush.bf16.msra.mxu0 %v1924_v57 }
 0x2d2   :  { %1493 = vmatmul.msk.bf16.vlgmr.msrb.gmra.mxu1 %vm72_vm0, %v374_v59 }
 0x2d7   :  { %v359_v60 = vpop.f32.mrf.mxu3 }
 0x2df   :  { %v361_v0 = vpop.f32.mrf.mxu3 }
 0x2e0   :  { %v375_v1 = vpack.c.bf16 %v361_v0, %v359_v60 }
 0x2e2   :  { %1494 = vmatmul.msk.bf16.gmra.mxu1 %vm72_vm0, %v375_v1 }
 0x2e7   :  { %v364_v2 = vpop.f32.mrf.mxu3 }
 0x2ef   :  { %v366_v3 = vpop.f32.mrf.mxu3 }
 0x2f0   :  { %v376_v4 = vpack.c.bf16 %v366_v3, %v364_v2 }
 0x2f2   :  { %1495 = vmatmul.msk.bf16.gmra.mxu1 %vm72_vm0, %v376_v4 }
 0x2f7   :  { %v369_v5 = vpop.f32.mrf.mxu3 }
 0x2ff   :  { %v371_v6 = vpop.f32.mrf.mxu3 }
 0x300   :  { %v377_v7 = vpack.c.bf16 %v371_v6, %v369_v5 }
 0x302   :  { %1496 = vmatmul.msk.bf16.gmra.mxu1 %vm72_vm0, %v377_v7 }
 0x34f   :  { %v1931_v8 = vpop.f32.mrf.mxu1 }
 0x350   :  { %v420_v9 = vmul.f32 %v1931_v8, %v1931_v8 }
 0x352   :  { %v428_v10 = vsel %vm72_vm0, %v420_v9, 0.0 }
 0x353   :  { %429 = vadd.xlane.f32.xlu2 %v428_v10 }
 0x357   :  { %v1936_v11 = vpop.f32.mrf.mxu1 }
 0x358   :  { %v421_v12 = vmul.f32 %v1936_v11, %v1936_v11 }
 0x35a   :  { %v431_v13 = vsel %vm72_vm0, %v421_v12, 0.0 }
 0x35b   :  { %432 = vadd.xlane.f32.xlu1 %v431_v13 }
 0x35f   :  { %v1941_v14 = vpop.f32.mrf.mxu1 }
 0x360   :  { %v422_v15 = vmul.f32 %v1941_v14, %v1941_v14 }
 0x362   :  { %v434_v16 = vsel %vm72_vm0, %v422_v15, 0.0 }
 0x363   :  { %435 = vadd.xlane.f32.xlu2 %v434_v16 }
 0x367   :  { %v1946_v17 = vpop.f32.mrf.mxu1 }
 0x368   :  { %v423_v19 = vmul.f32 %v1946_v17, %v1946_v17 }
 0x36a   :  { %v437_v21 = vsel %vm72_vm0, %v423_v19, 0.0 }
 0x36b   :  { %438 = vadd.xlane.f32.xlu1 %v437_v21 }
 0x36f   :  { %v1951_v22 = vpop.f32.mrf.mxu1 }
 0x370   :  { %v424_v25 = vmul.f32 %v1951_v22, %v1951_v22 }
 0x372   :  { %v440_v26 = vsel %vm72_vm0, %v424_v25, 0.0 }
 0x373   :  { %441 = vadd.xlane.f32.xlu2 %v440_v26 }
 0x377   :  { %v1956_v28 = vpop.f32.mrf.mxu1 }
 0x378   :  { %v425_v29 = vmul.f32 %v1956_v28, %v1956_v28 }
 0x37a   :  { %v443_v31 = vsel %vm72_vm0, %v425_v29, 0.0 }
 0x37b   :  { %444 = vadd.xlane.f32.xlu1 %v443_v31 }
 0x37f   :  { %v1962_v36 = vpop.f32.mrf.mxu1 }
 0x380   :  { %v426_v37 = vmul.f32 %v1962_v36, %v1962_v36 }
 0x382   :  { %v446_v39 = vsel %vm72_vm0, %v426_v37, 0.0 }
 0x383   :  { %447 = vadd.xlane.f32.xlu2 %v446_v39 }
 0x387   :  { %v1970_v24 = vpop.f32.mrf.mxu1 }
 0x388   :  { %v427_v42 = vmul.f32 %v1970_v24, %v1970_v24 }
 0x38a   :  { %v449_v44 = vsel %vm72_vm0, %v427_v42, 0.0 }
 0x38b   :  { %234 = vadd.xlane.f32.xlu2 %v233_v43  ;;  %450 = vadd.xlane.f32.xlu1 %v449_v44 }
 0x393   :  { %237 = vadd.xlane.f32.xlu1 %v236_v45 }
 0x3c6   :  { %v430_v46 = vpop.xlane.xlu2 %429 }
 0x3c7   :  { %1543 = vrsqrt.f32 %v430_v46  ;;  %vm459_vm14 = vcmp.eq.f32.partialorder %v430_v46, inf  ;;  %v462_v60 = vand.u32 2147483648, %v430_v46  ;;  %vm461_vm15 = vcmp.eq.f32.partialorder %v430_v46, 0.0 }
 0x3cd   :  { %v1544_v47 = vpop.eup %1543 }
 0x3ce   :  { %v453_v48 = vmul.f32 %v1544_v47, %v430_v46  ;;  %v433_v49 = vpop.xlane.xlu1 %432 }
 0x3cf   :  { %1545 = vrsqrt.f32 %v433_v49  ;;  %vm471_vm2 = vcmp.eq.f32.partialorder %v433_v49, inf  ;;  %v474_v13 = vand.u32 2147483648, %v433_v49  ;;  %vm473_vm3 = vcmp.eq.f32.partialorder %v433_v49, 0.0 }
 0x3d0   :  { %v454_v50 = vmul.f32 %v1544_v47, %v453_v48 }
 0x3d2   :  { %v455_v51 = vmul.f32 0.5, %v454_v50 }
 0x3d4   :  { %v456_v52 = vsub.f32 1.5, %v455_v51 }
 0x3d5   :  { %v1546_v53 = vpop.eup %1545 }
 0x3d6   :  { %v457_v54 = vmul.f32 %v1544_v47, %v456_v52  ;;  %v465_v55 = vmul.f32 %v1546_v53, %v433_v49  ;;  %v436_v56 = vpop.xlane.xlu2 %435 }
 0x3d7   :  { %1547 = vrsqrt.f32 %v436_v56  ;;  %vm483_vm4 = vcmp.eq.f32.partialorder %v436_v56, inf  ;;  %vm485_vm5 = vcmp.eq.f32.partialorder %v436_v56, 0.0  ;;  %v486_v39 = vand.u32 2147483648, %v436_v56 }
 0x3d8   :  { %v458_v58 = vmul.f32 %v457_v54, %v430_v46  ;;  %v466_v59 = vmul.f32 %v1546_v53, %v465_v55 }
 0x3da   :  { %v460_v0 = vsel %vm459_vm14, %v430_v46, %v458_v58  ;;  %v467_v1 = vmul.f32 0.5, %v466_v59 }
 0x3db   :  { %v463_v2 = vsel %vm461_vm15, %v462_v60, %v460_v0 }
 0x3dc   :  { %v548_v3 = vmax.f32 %v463_v2, 1e-12  ;;  %v468_v4 = vsub.f32 1.5, %v467_v1 }
 0x3dd   :  { %v1548_v5 = vpop.eup %1547 }
 0x3de   :  { %1549 = vrcp.f32 %v548_v3  ;;  %v469_v6 = vmul.f32 %v1546_v53, %v468_v4  ;;  %v477_v7 = vmul.f32 %v1548_v5, %v436_v56  ;;  %v1981_v9 = vpop.xlane.xlu1 %438  ;;  %v567_v40 = vand.u32 2147483648, %v548_v3 }
 0x3df   :  { %1551 = vrsqrt.f32 %v1981_v9  ;;  %v565_v46 = vand.u32 2147483647, %v548_v3  ;;  %vm561_vm8 = vweird.f32 %v548_v3  ;;  %vm495_vm10 = vcmp.eq.f32.partialorder %v1981_v9, inf }
 0x3e0   :  { %v470_v10 = vmul.f32 %v469_v6, %v433_v49  ;;  %v478_v12 = vmul.f32 %v1548_v5, %v477_v7  ;;  %v568_v52 = vor.u32 1.1754944e-38, %v567_v40  ;;  %vm497_vm13 = vcmp.eq.f32.partialorder %v1981_v9, 0.0 }
 0x3e1   :  { %vm566_vm12 = vcmp.eq.f32.partialorder %v565_v46, 8.507059e+37  ;;  %v498_v2 = vand.u32 2147483648, %v1981_v9 }
 0x3e2   :  { %v472_v15 = vsel %vm471_vm2, %v433_v49, %v470_v10  ;;  %v479_v16 = vmul.f32 0.5, %v478_v12 }
 0x3e3   :  { %v475_v19 = vsel %vm473_vm3, %v474_v13, %v472_v15 }
 0x3e4   :  { %v1550_v21 = vpop.eup %1549  ;;  %v1984_v25 = vmax.f32 %v475_v19, 1e-12  ;;  %v480_v26 = vsub.f32 1.5, %v479_v16 }
 0x3e5   :  { %v1552_v27 = vpop.eup %1551  ;;  %v557_v29 = vmul.f32 %v1550_v21, %v548_v3  ;;  %vm562_vm7 = vweird.f32 %v1550_v21 }
 0x3e6   :  { %1553 = vrcp.f32 %v1984_v25  ;;  %v481_v30 = vmul.f32 %v1548_v5, %v480_v26  ;;  %v489_v31 = vmul.f32 %v1552_v27, %v1981_v9  ;;  %v1988_v32 = vpop.xlane.xlu2 %441  ;;  %vm563_vm9 = vmor %vm561_vm8, %vm562_vm7  ;;  %v582_v4 = vand.u32 2147483648, %v1984_v25 }
 0x3e7   :  { %1555 = vrsqrt.f32 %v1988_v32  ;;  %v558_v38 = vsub.f32 1.0, %v557_v29  ;;  %v580_v13 = vand.u32 2147483647, %v1984_v25  ;;  %vm576_vm15 = vweird.f32 %v1984_v25 }
 0x3e8   :  { %v482_v35 = vmul.f32 %v481_v30, %v436_v56  ;;  %v490_v37 = vmul.f32 %v1552_v27, %v489_v31  ;;  %vm507_vm3 = vcmp.eq.f32.partialorder %v1988_v32, inf }
 0x3e9   :  { %v559_v44 = vmul.f32 %v1550_v21, %v558_v38 }
 0x3ea   :  { %v484_v42 = vsel %vm483_vm4, %v436_v56, %v482_v35  ;;  %v491_v43 = vmul.f32 0.5, %v490_v37  ;;  %vm581_vm4 = vcmp.eq.f32.partialorder %v580_v13, 8.507059e+37 }
 0x3eb   :  { %v487_v45 = vsel %vm485_vm5, %v486_v39, %v484_v42  ;;  %v560_v50 = vadd.f32 %v1550_v21, %v559_v44  ;;  %vm509_vm5 = vcmp.eq.f32.partialorder %v1988_v32, 0.0  ;;  %v510_v39 = vand.u32 2147483648, %v1988_v32 }
 0x3ec   :  { %v1554_v47 = vpop.eup %1553  ;;  %v1991_v48 = vmax.f32 %v487_v45, 1e-12  ;;  %v492_v49 = vsub.f32 1.5, %v491_v43 }
 0x3ed   :  { %v1556_v51 = vpop.eup %1555  ;;  %v572_v53 = vmul.f32 %v1554_v47, %v1984_v25  ;;  %v564_v58 = vsel %vm563_vm9, %v1550_v21, %v560_v50  ;;  %vm577_vm14 = vweird.f32 %v1554_v47 }
 0x3ee   :  { %1557 = vrcp.f32 %v1991_v48  ;;  %v493_v54 = vmul.f32 %v1552_v27, %v492_v49  ;;  %v501_v55 = vmul.f32 %v1556_v51, %v1988_v32  ;;  %v1996_v56 = vpop.xlane.xlu1 %444  ;;  %v569_v0 = vsel %vm566_vm12, %v568_v52, %v564_v58  ;;  %vm578_vm2 = vmor %vm576_vm15, %vm577_vm14 }
 0x3ef   :  { %1559 = vrsqrt.f32 %v1996_v56  ;;  %v573_v1 = vsub.f32 1.0, %v572_v53  ;;  %v2004_v3 = vmul.f32 %v569_v0, %v1931_v8  ;;  %v597_v42 = vand.u32 2147483648, %v1991_v48 }
 0x3f0   :  { %v494_v59 = vmul.f32 %v493_v54, %v1981_v9  ;;  %v502_v60 = vmul.f32 %v1556_v51, %v501_v55  ;;  %v595_v49 = vand.u32 2147483647, %v1991_v48  ;;  %vm591_vm8 = vweird.f32 %v1991_v48 }
 0x3f1   :  { %v574_v7 = vmul.f32 %v1554_v47, %v573_v1  ;;  %v676_v12 = vsel %vm72_vm0, %v2004_v3, -inf }
 0x3f2   :  { %v496_v5 = vsel %vm495_vm10, %v1981_v9, %v494_v59  ;;  %v503_v6 = vmul.f32 0.5, %v502_v60  ;;  %677 = vmax.xlane.f32.xlu2 %v676_v12  ;;  %v583_v9 = vor.u32 1.1754944e-38, %v582_v4  ;;  %vm519_vm10 = vcmp.eq.f32.partialorder %v1996_v56, inf }
 0x3f3   :  { %v499_v10 = vsel %vm497_vm13, %v498_v2, %v496_v5  ;;  %v575_v8 = vadd.f32 %v1554_v47, %v574_v7  ;;  %vm596_vm12 = vcmp.eq.f32.partialorder %v595_v49, 8.507059e+37  ;;  %vm521_vm13 = vcmp.eq.f32.partialorder %v1996_v56, 0.0 }
 0x3f4   :  { %v1558_v15 = vpop.eup %1557  ;;  %v2011_v16 = vmax.f32 %v499_v10, 1e-12  ;;  %v504_v19 = vsub.f32 1.5, %v503_v6  ;;  %v522_v2 = vand.u32 2147483648, %v1996_v56 }
 0x3f5   :  { %v1560_v21 = vpop.eup %1559  ;;  %v587_v26 = vmul.f32 %v1558_v15, %v1991_v48  ;;  %v579_v31 = vsel %vm578_vm2, %v1554_v47, %v575_v8  ;;  %vm592_vm7 = vweird.f32 %v1558_v15 }
 0x3f6   :  { %1561 = vrcp.f32 %v2011_v16  ;;  %v505_v27 = vmul.f32 %v1556_v51, %v504_v19  ;;  %v513_v29 = vmul.f32 %v1560_v21, %v1996_v56  ;;  %v2017_v30 = vpop.xlane.xlu2 %447  ;;  %v584_v37 = vsel %vm581_vm4, %v583_v9, %v579_v31  ;;  %vm593_vm9 = vmor %vm591_vm8, %vm592_vm7 }
 0x3f7   :  { %1563 = vrsqrt.f32 %v2017_v30  ;;  %v588_v38 = vsub.f32 1.0, %v587_v26  ;;  %v2025_v40 = vmul.f32 %v584_v37, %v1936_v11  ;;  %v610_v12 = vand.u32 2147483647, %v2011_v16 }
 0x3f8   :  { %v506_v25 = vmul.f32 %v505_v27, %v1988_v32  ;;  %v514_v35 = vmul.f32 %v1560_v21, %v513_v29  ;;  %v612_v13 = vand.u32 2147483648, %v2011_v16  ;;  %vm531_vm15 = vcmp.eq.f32.partialorder %v2017_v30, inf }
 0x3f9   :  { %v589_v45 = vmul.f32 %v1558_v15, %v588_v38  ;;  %v679_v47 = vsel %vm72_vm0, %v2025_v40, -inf  ;;  %vm606_vm2 = vweird.f32 %v2011_v16  ;;  %vm611_vm4 = vcmp.eq.f32.partialorder %v610_v12, 8.507059e+37 }
 0x3fa   :  { %v508_v43 = vsel %vm507_vm3, %v1988_v32, %v506_v25  ;;  %v515_v44 = vmul.f32 0.5, %v514_v35  ;;  %680 = vmax.xlane.f32.xlu1 %v679_v47  ;;  %v598_v32 = vor.u32 1.1754944e-38, %v597_v42  ;;  %v613_v35 = vor.u32 1.1754944e-38, %v612_v13 }
 0x3fb   :  { %v511_v46 = vsel %vm509_vm5, %v510_v39, %v508_v43  ;;  %v590_v11 = vadd.f32 %v1558_v15, %v589_v45  ;;  %vm533_vm7 = vcmp.eq.f32.partialorder %v2017_v30, 0.0 }
 0x3fc   :  { %v1562_v50 = vpop.eup %1561  ;;  %v2032_v51 = vmax.f32 %v511_v46, 1e-12  ;;  %v516_v52 = vsub.f32 1.5, %v515_v44 }
 0x3fd   :  { %v1564_v53 = vpop.eup %1563  ;;  %v602_v54 = vmul.f32 %v1562_v50, %v2011_v16  ;;  %v594_v60 = vsel %vm593_vm9, %v1558_v15, %v590_v11  ;;  %vm607_vm14 = vweird.f32 %v1562_v50 }
 0x3fe   :  { %1565 = vrcp.f32 %v2032_v51  ;;  %v517_v55 = vmul.f32 %v1560_v21, %v516_v52  ;;  %v525_v58 = vmul.f32 %v1564_v53, %v2017_v30  ;;  %v2038_v59 = vpop.xlane.xlu1 %450  ;;  %v599_v48 = vsel %vm596_vm12, %v598_v32, %v594_v60  ;;  %v235_v10 = vpop.xlane.xlu2 %234  ;;  %vm608_vm3 = vmor %vm606_vm2, %vm607_vm14 }
 0x3ff   :  { %1567 = vrsqrt.f32 %v2038_v59  ;;  %v2046_v4 = vmul.f32 %v599_v48, %v1941_v14  ;;  %v603_v5 = vsub.f32 1.0, %v602_v54  ;;  %v625_v16 = vand.u32 2147483647, %v2032_v51 }
 0x400   :  { %v518_v0 = vmul.f32 %v517_v55, %v1996_v56  ;;  %v526_v1 = vmul.f32 %v1564_v53, %v525_v58  ;;  %1569 = vrcp.f32 %v235_v10  ;;  %v627_v44 = vand.u32 2147483648, %v2032_v51 }
 0x401   :  { %v682_v19 = vsel %vm72_vm0, %v2046_v4, -inf  ;;  %v604_v8 = vmul.f32 %v1562_v50, %v603_v5  ;;  %vm621_vm8 = vweird.f32 %v2032_v51  ;;  %vm545_vm14 = vcmp.eq.f32.partialorder %v2038_v59, 0.0 }
 0x402   :  { %v520_v6 = vsel %vm519_vm10, %v1996_v56, %v518_v0  ;;  %v527_v7 = vmul.f32 0.5, %v526_v1  ;;  %v534_v56 = vand.u32 2147483648, %v2017_v30  ;;  %683 = vmax.xlane.f32.xlu2 %v682_v19  ;;  %v628_v55 = vor.u32 1.1754944e-38, %v627_v44 }
 0x403   :  { %v523_v15 = vsel %vm521_vm13, %v522_v2, %v520_v6  ;;  %v605_v26 = vadd.f32 %v1562_v50, %v604_v8  ;;  %vm626_vm10 = vcmp.eq.f32.partialorder %v625_v16, 8.507059e+37  ;;  %vm543_vm13 = vcmp.eq.f32.partialorder %v2038_v59, inf }
 0x404   :  { %v1566_v21 = vpop.eup %1565  ;;  %v2053_v9 = vmax.f32 %v523_v15, 1e-12  ;;  %v528_v14 = vsub.f32 1.5, %v527_v7 }
 0x405   :  { %v617_v27 = vmul.f32 %v1566_v21, %v2032_v51  ;;  %v1568_v29 = vpop.eup %1567  ;;  %v609_v38 = vsel %vm608_vm3, %v1562_v50, %v605_v26  ;;  %vm622_vm5 = vweird.f32 %v1566_v21 }
 0x406   :  { %1571 = vrcp.f32 %v2053_v9  ;;  %v529_v31 = vmul.f32 %v1564_v53, %v528_v14  ;;  %v238_v25 = vpop.xlane.xlu1 %237  ;;  %v537_v37 = vmul.f32 %v1568_v29, %v2038_v59  ;;  %v614_v43 = vsel %vm611_vm4, %v613_v35, %v609_v38  ;;  %v1570_v50 = vpop.eup %1569  ;;  %vm623_vm9 = vmor %vm621_vm8, %vm622_vm5 }
 0x407   :  { %1573 = vrcp.f32 %v238_v25  ;;  %v618_v39 = vsub.f32 1.0, %v617_v27  ;;  %v2066_v46 = vmul.f32 %v614_v43, %v1946_v17  ;;  %v249_v1 = vmul.f32 %v1570_v50, %v1968_v41 }
 0x408   :  { %v530_v42 = vmul.f32 %v529_v31, %v2017_v30  ;;  %v538_v45 = vmul.f32 %v1568_v29, %v537_v37  ;;  %v640_v10 = vand.u32 2147483647, %v2053_v9  ;;  %v642_v12 = vand.u32 2147483648, %v2053_v9 }
 0x409   :  { %v619_v47 = vmul.f32 %v1566_v21, %v618_v39  ;;  %v685_v53 = vsel %vm72_vm0, %v2066_v46, -inf  ;;  %v546_v41 = vand.u32 2147483648, %v2038_v59 }
 0x40a   :  { %v532_v49 = vsel %vm531_vm15, %v2017_v30, %v530_v42  ;;  %v539_v11 = vmul.f32 0.5, %v538_v45  ;;  %686 = vmax.xlane.f32.xlu1 %v685_v53  ;;  %vm636_vm15 = vweird.f32 %v2053_v9  ;;  %v643_v14 = vor.u32 1.1754944e-38, %v642_v12 }
 0x40b   :  { %v535_v52 = vsel %vm533_vm7, %v534_v56, %v532_v49  ;;  %v620_v32 = vadd.f32 %v1566_v21, %v619_v47  ;;  %vm641_vm3 = vcmp.eq.f32.partialorder %v640_v10, 8.507059e+37 }
 0x40c   :  { %v1572_v54 = vpop.eup %1571  ;;  %v554_v17 = vmax.f32 %v535_v52, 1e-12  ;;  %v540_v60 = vsub.f32 1.5, %v539_v11 }
 0x40d   :  { %v1574_v58 = vpop.eup %1573  ;;  %v624_v0 = vsel %vm623_vm9, %v1566_v21, %v620_v32  ;;  %v632_v30 = vmul.f32 %v1572_v54, %v2053_v9  ;;  %vm637_vm12 = vweird.f32 %v1572_v54 }
 0x40e   :  { %1575 = vrcp.f32 %v554_v17  ;;  %v629_v51 = vsel %vm626_vm10, %v628_v55, %v624_v0  ;;  %v250_v48 = vmul.f32 %v1574_v58, %v1977_v23  ;;  %v541_v2 = vmul.f32 %v1568_v29, %v540_v60  ;;  %vm638_vm2 = vmor %vm636_vm15, %vm637_vm12 }
 0x40f   :  { %v2079_v5 = vmul.f32 %v629_v51, %v1951_v22  ;;  %v633_v6 = vsub.f32 1.0, %v632_v30  ;;  %v657_v35 = vand.u32 2147483648, %v554_v17  ;;  %v655_v9 = vand.u32 2147483647, %v554_v17 }
 0x410   :  { %v253_v7 = vpack.c.bf16 %v250_v48, %v249_v1  ;;  %v542_v13 = vmul.f32 %v541_v2, %v2038_v59  ;;  %vm651_vm5 = vweird.f32 %v554_v17 }
 0x411   :  { %v688_v15 = vsel %vm72_vm0, %v2079_v5, -inf  ;;  %v634_v19 = vmul.f32 %v1572_v54, %v633_v6  ;;  %v658_v39 = vor.u32 1.1754944e-38, %v657_v35  ;;  %vm656_vm8 = vcmp.eq.f32.partialorder %v655_v9, 8.507059e+37 }
 0x412   :  { %689 = vmax.xlane.f32.xlu2 %v688_v15  ;;  %1483 = vmatmul.msk.bf16.vlgmr.msra.gmra.mxu2 %vm208_vm6, %v253_v7  ;;  %v544_v22 = vsel %vm543_vm13, %v2038_v59, %v542_v13 }
 0x413   :  { %v635_v23 = vadd.f32 %v1572_v54, %v634_v19  ;;  %v547_v21 = vsel %vm545_vm14, %v546_v41, %v544_v22 }
 0x414   :  { %v1576_v8 = vpop.eup %1575  ;;  %v555_v56 = vmax.f32 %v547_v21, 1e-12 }
 0x415   :  { %v639_v26 = vsel %vm638_vm2, %v1572_v54, %v635_v23  ;;  %v647_v27 = vmul.f32 %v1576_v8, %v554_v17  ;;  %vm652_vm4 = vweird.f32 %v1576_v8  ;;  %vm891_vm2 = vcmask 1043456  }
 0x416   :  { %v644_v29 = vsel %vm641_vm3, %v643_v14, %v639_v26  ;;  %1577 = vrcp.f32 %v555_v56  ;;  %vm653_vm7 = vmor %vm651_vm5, %vm652_vm4  ;;  %v672_v49 = vand.u32 2147483648, %v555_v56  ;;  %v670_v52 = vand.u32 2147483647, %v555_v56 }
 0x417   :  { %v2093_v31 = vmul.f32 %v644_v29, %v1956_v28  ;;  %v648_v25 = vsub.f32 1.0, %v647_v27  ;;  %vm666_vm10 = vweird.f32 %v555_v56 }
 0x418   :  { %v673_v53 = vor.u32 1.1754944e-38, %v672_v49  ;;  %vm671_vm13 = vcmp.eq.f32.partialorder %v670_v52, 8.507059e+37 }
 0x419   :  { %v691_v59 = vsel %vm72_vm0, %v2093_v31, -inf  ;;  %v649_v37 = vmul.f32 %v1576_v8, %v648_v25 }
 0x41a   :  { %692 = vmax.xlane.f32.xlu1 %v691_v59 }
 0x41b   :  { %v650_v38 = vadd.f32 %v1576_v8, %v649_v37 }
 0x41c   :  { %v1578_v42 = vpop.eup %1577 }
 0x41d   :  { %v654_v43 = vsel %vm653_vm7, %v1576_v8, %v650_v38  ;;  %v662_v44 = vmul.f32 %v1578_v42, %v555_v56  ;;  %vm667_vm9 = vweird.f32 %v1578_v42 }
 0x41e   :  { %v659_v16 = vsel %vm656_vm8, %v658_v39, %v654_v43  ;;  %vm668_vm12 = vmor %vm666_vm10, %vm667_vm9 }
 0x41f   :  { %v660_v28 = vmul.f32 %v659_v16, %v1962_v36  ;;  %v663_v45 = vsub.f32 1.0, %v662_v44 }
 0x421   :  { %v694_v47 = vsel %vm72_vm0, %v660_v28, -inf  ;;  %v664_v50 = vmul.f32 %v1578_v42, %v663_v45 }
 0x422   :  { %695 = vmax.xlane.f32.xlu2 %v694_v47 }
 0x423   :  { %v665_v11 = vadd.f32 %v1578_v42, %v664_v50 }
 0x425   :  { %v669_v32 = vsel %vm668_vm12, %v1578_v42, %v665_v11 }
 0x426   :  { %v674_v54 = vsel %vm671_vm13, %v673_v53, %v669_v32 }
 0x427   :  { %v675_v17 = vmul.f32 %v674_v54, %v1970_v24 }
 0x429   :  { %v697_v55 = vsel %vm72_vm0, %v675_v17, -inf }
 0x42a   :  { %698 = vmax.xlane.f32.xlu1 %v697_v55 }
 0x465   :  { %v678_v36 = vpop.xlane.xlu2 %677 }
 0x466   :  { %v700_v58 = vsub.f32 %v2004_v3, %v678_v36 }
 0x468   :  { %v708_v60 = vmul.f32 1.442695, %v700_v58 }
 0x46a   :  { %1579 = vpow2.f32 %v708_v60 }
 0x46d   :  { %v681_v0 = vpop.xlane.xlu1 %680 }
 0x46e   :  { %v701_v30 = vsub.f32 %v2025_v40, %v681_v0 }
 0x470   :  { %v2103_v51 = vpop.eup %1579  ;;  %v710_v1 = vmul.f32 1.442695, %v701_v30 }
 0x471   :  { %v724_v48 = vsel %vm72_vm0, %v2103_v51, 0.0 }
 0x472   :  { %1581 = vpow2.f32 %v710_v1  ;;  %725 = vadd.xlane.f32.xlu2 %v724_v48 }
 0x475   :  { %v684_v24 = vpop.xlane.xlu2 %683 }
 0x476   :  { %v702_v2 = vsub.f32 %v2046_v4, %v684_v24 }
 0x478   :  { %v2108_v6 = vpop.eup %1581  ;;  %v712_v7 = vmul.f32 1.442695, %v702_v2 }
 0x479   :  { %v727_v3 = vsel %vm72_vm0, %v2108_v6, 0.0 }
 0x47a   :  { %1583 = vpow2.f32 %v712_v7  ;;  %728 = vadd.xlane.f32.xlu1 %v727_v3 }
 0x47d   :  { %v687_v40 = vpop.xlane.xlu1 %686 }
 0x47e   :  { %v703_v10 = vsub.f32 %v2066_v46, %v687_v40 }
 0x480   :  { %v2113_v12 = vpop.eup %1583  ;;  %v714_v13 = vmul.f32 1.442695, %v703_v10 }
 0x481   :  { %v730_v15 = vsel %vm72_vm0, %v2113_v12, 0.0 }
 0x482   :  { %1585 = vpow2.f32 %v714_v13  ;;  %731 = vadd.xlane.f32.xlu2 %v730_v15 }
 0x485   :  { %v690_v4 = vpop.xlane.xlu2 %689 }
 0x486   :  { %v704_v19 = vsub.f32 %v2079_v5, %v690_v4 }
 0x488   :  { %v716_v41 = vmul.f32 1.442695, %v704_v19  ;;  %v2118_v22 = vpop.eup %1585 }
 0x489   :  { %v733_v23 = vsel %vm72_vm0, %v2118_v22, 0.0 }
 0x48a   :  { %1587 = vpow2.f32 %v716_v41  ;;  %734 = vadd.xlane.f32.xlu1 %v733_v23  ;;  %v1110_v23 = vld [vmem:[%s2281_s12] sm:$0xff] }
 0x48d   :  { %v693_v46 = vpop.xlane.xlu1 %692 }
 0x48e   :  { %v705_v8 = vsub.f32 %v2093_v31, %v693_v46  ;;  %v1111_v46 = vpack.c.bf16 %v1110_v23, %v1110_v23 }
 0x490   :  { %v2123_v21 = vpop.eup %1587  ;;  %v718_v14 = vmul.f32 1.442695, %v705_v8  ;;  %v1119_v8 = vsel %vm891_vm2, %v1111_v46, 0 }
 0x491   :  { %v736_v56 = vsel %vm72_vm0, %v2123_v21, 0.0 }
 0x492   :  { %1589 = vpow2.f32 %v718_v14  ;;  %737 = vadd.xlane.f32.xlu2 %v736_v56  ;;  %v1687_v14 = vld [vmem:[%s2277_s1 + $0x10] sm:$0xff]  ;;  %v1688_v56 = vld [vmem:[%s2277_s1 + $0x18] sm:$0xff] }
 0x495   :  { %v696_v5 = vpop.xlane.xlu2 %695  ;;  %v272_v26 = vpop.f32.mrf.mxu2 }
 0x496   :  { %v706_v27 = vsub.f32 %v660_v28, %v696_v5  ;;  %v286_v29 = vmin.f32 %v272_v26, 0.0  ;;  %vm282_vm14 = vcmp.gt.f32.partialorder %v272_v26, 0.0  ;;  %v854_v5 = vpack.c.bf16 %v1688_v56, %v1687_v14 }
 0x498   :  { %v1590_v25 = vpop.eup %1589  ;;  %v720_v35 = vmul.f32 1.442695, %v706_v27  ;;  %v290_v37 = vmul.f32 1.442695, %v286_v29 }
 0x499   :  { %v739_v59 = vsel %vm72_vm0, %v1590_v25, 0.0 }
 0x49a   :  { %1591 = vpow2.f32 %v720_v35  ;;  %740 = vadd.xlane.f32.xlu0 %v739_v59 }
 0x49b   :  { %1593 = vpow2.f32 %v290_v37 }
 0x49d   :  { %v274_v31 = vpop.f32.mrf.mxu2  ;;  %v699_v38 = vpop.xlane.xlu1 %698 }
 0x49e   :  { %v287_v9 = vmin.f32 %v274_v31, 0.0  ;;  %v707_v39 = vsub.f32 %v675_v17, %v699_v38  ;;  %vm283_vm15 = vcmp.gt.f32.partialorder %v274_v31, 0.0 }
 0x4a0   :  { %v1592_v42 = vpop.eup %1591  ;;  %v292_v43 = vmul.f32 1.442695, %v287_v9  ;;  %v722_v16 = vmul.f32 1.442695, %v707_v39 }
 0x4a1   :  { %v742_v44 = vsel %vm72_vm0, %v1592_v42, 0.0  ;;  %v1594_v28 = vpop.eup %1593 }
 0x4a2   :  { %1595 = vpow2.f32 %v292_v43  ;;  %743 = vadd.xlane.f32.xlu1 %v742_v44  ;;  %v1485_v45 = vadd.f32 -1.0, %v1594_v28  ;;  %v1087_v43 = vld [vmem:[%s2285_s11 + $0x8] sm:$0xff]  ;;  %v1525_v28 = vld [vmem:[%s2282_s10] ss:$0 sm:$0xff] }
 0x4a3   :  { %1597 = vpow2.f32 %v722_v16 }
 0x4a4   :  { %v302_v11 = vsel %vm282_vm14, %v272_v26, %v1485_v45  ;;  %v852_v26 = vld [vmem:[%s2284_s7] sm:$0xff] }
 0x4a5   :  { %v884_v27 = vpack.c.bf16 %v852_v26, %v852_v26 }
 0x4a7   :  { %v893_v29 = vsel %vm891_vm2, %v884_v27, 0 }
 0x4a8   :  { %v1596_v47 = vpop.eup %1595 }
 0x4a9   :  { %v1598_v49 = vpop.eup %1597  ;;  %v1486_v50 = vadd.f32 -1.0, %v1596_v47 }
 0x4aa   :  { %v745_v52 = vsel %vm72_vm0, %v1598_v49, 0.0 }
 0x4ab   :  { %v303_v53 = vsel %vm283_vm15, %v274_v31, %v1486_v50  ;;  %746 = vadd.xlane.f32.xlu2 %v745_v52 }
 0x4ac   :  { %v855_v32 = vpack.c.bf16 %v303_v53, %v302_v11 }
 0x4ae   :  { %870 = vmatpush.bf16.msra.mxu0 %v855_v32 }
 0x4e5   :  { %v726_v54 = vpop.xlane.xlu2 %725 }
 0x4e6   :  { %1599 = vrcp.f32 %v726_v54 }
 0x4ec   :  { %v1600_v17 = vpop.eup %1599 }
 0x4ed   :  { %v729_v55 = vpop.xlane.xlu1 %728  ;;  %v756_v36 = vmul.f32 %v1600_v17, %v2103_v51 }
 0x4ee   :  { %1601 = vrcp.f32 %v729_v55 }
 0x4ef   :  { %764 = vxpose.xlu0.b32.start [1/8] (short) (narrow) %v756_v36, 16 }
 0x4f4   :  { %v1602_v58 = vpop.eup %1601 }
 0x4f5   :  { %v732_v60 = vpop.xlane.xlu2 %731  ;;  %v757_v0 = vmul.f32 %v1602_v58, %v2108_v6 }
 0x4f6   :  { %1603 = vrcp.f32 %v732_v60 }
 0x4f7   :  { %765 = vxpose.xlu0.b32.cont [2/8] (short) (narrow) %v757_v0, 16 }
 0x4fc   :  { %v1604_v30 = vpop.eup %1603 }
 0x4fd   :  { %v735_v1 = vpop.xlane.xlu1 %734  ;;  %v758_v48 = vmul.f32 %v1604_v30, %v2113_v12 }
 0x4fe   :  { %1605 = vrcp.f32 %v735_v1 }
 0x4ff   :  { %766 = vxpose.xlu0.b32.cont [3/8] (short) (narrow) %v758_v48, 16 }
 0x504   :  { %v1606_v2 = vpop.eup %1605 }
 0x505   :  { %v738_v24 = vpop.xlane.xlu2 %737  ;;  %v759_v7 = vmul.f32 %v1606_v2, %v2118_v22 }
 0x506   :  { %1607 = vrcp.f32 %v738_v24 }
 0x507   :  { %767 = vxpose.xlu0.b32.cont [4/8] (short) (narrow) %v759_v7, 16 }
 0x50c   :  { %v1608_v51 = vpop.eup %1607 }
 0x50d   :  { %v741_v3 = vpop.xlane.xlu0 %740  ;;  %v760_v40 = vmul.f32 %v1608_v51, %v2123_v21 }
 0x50e   :  { %1609 = vrcp.f32 %v741_v3 }
 0x50f   :  { %768 = vxpose.xlu0.b32.cont [5/8] (short) (narrow) %v760_v40, 16 }
 0x514   :  { %v1610_v6 = vpop.eup %1609 }
 0x515   :  { %v744_v10 = vpop.xlane.xlu1 %743  ;;  %v761_v13 = vmul.f32 %v1610_v6, %v1590_v25 }
 0x516   :  { %1611 = vrcp.f32 %v744_v10 }
 0x517   :  { %769 = vxpose.xlu0.b32.cont [6/8] (short) (narrow) %v761_v13, 16 }
 0x51c   :  { %v1612_v12 = vpop.eup %1611 }
 0x51d   :  { %v762_v15 = vmul.f32 %v1612_v12, %v1592_v42  ;;  %v1086_v42 = vld [vmem:[%s2285_s11] sm:$0xff] }
 0x51e   :  { %v747_v4 = vpop.xlane.xlu2 %746  ;;  %v1089_v16 = vpack.c.bf16 %v1087_v43, %v1086_v42 }
 0x51f   :  { %1613 = vrcp.f32 %v747_v4  ;;  %770 = vxpose.xlu0.b32.cont [7/8] (short) (narrow) %v762_v15, 16 }
 0x520   :  { %1100 = vmatpush.bf16.msra.mxu3 %v1089_v16 }
 0x525   :  { %v1614_v19 = vpop.eup %1613 }
 0x526   :  { %v763_v41 = vmul.f32 %v1614_v19, %v1598_v49 }
 0x528   :  { %771 = vxpose.xlu0.b32.end [8/8] (short) (narrow) %v763_v41, 16 }
 0x594   :  { %v780_v22 = vpop.trf.xlu0 }
 0x595   :  { %1497 = vmatmul.msk.f32.vlgmr.msrb.gmra.mxu0 %vm332_vm11, %v780_v22 }
 0x596   :  { %1128 = vmatpush.bf16.msrb.mxu0 %v1119_v8 }
 0x59c   :  { %v781_v21 = vpop.trf.xlu0 }
 0x59d   :  { %1498 = vmatmul.msk.f32.gmra.mxu0 %vm332_vm11, %v781_v21 }
 0x5a5   :  { %1500 = vmatmul.msk.bf16.vlgmr.msra.gmra.mxu0 %vm208_vm6, %v853_v63  ;;  %v828_v63 = vpack.c.bf16 %v826_v62, %v825_v61 }
 0x5a7   :  { %843 = vmatpush.bf16.msrb.mxu2 %v828_v63 }
 0x5ab   :  { %902 = vmatpush.bf16.msra.mxu2 %v893_v29 }
 0x5b5   :  { %1501 = vmatmul.msk.bf16.gmra.mxu0 %vm208_vm6, %v854_v5 }
 0x5c5   :  { %1505 = vmatmul.msk.bf16.vlgmr.msrb.gmra.mxu0 %vm107_vm1, %v855_v32 }
 0x5d5   :  { %1506 = vmatmul.msk.bf16.gmra.mxu0 %vm107_vm1, %v1924_v57 }
 0x612   :  { %v819_v25 = vpop.f32.mrf.mxu0 }
 0x61a   :  { %v822_v57 = vpop.f32.mrf.mxu0 }
 0x61b   :  { %v827_v35 = vpack.c.bf16 %v822_v57, %v819_v25 }
 0x61d   :  { %1499 = vmatmul.msk.bf16.vlgmr.msrb.gmra.mxu2 %vm72_vm0, %v827_v35 }
 0x622   :  { %v872_v59 = vpop.f32.mrf.mxu0 }
 0x62a   :  { %v874_v37 = vpop.f32.mrf.mxu0 }
 0x62b   :  { %v882_v31 = vpack.c.bf16 %v874_v37, %v872_v59 }
 0x62d   :  { %1502 = vmatmul.msk.bf16.vlgmr.msra.gmra.mxu2 %vm107_vm1, %v882_v31 }
 0x632   :  { %v877_v9 = vpop.f32.mrf.mxu0 }
 0x63a   :  { %v879_v38 = vpop.f32.mrf.mxu0 }
 0x63b   :  { %v883_v39 = vpack.c.bf16 %v879_v38, %v877_v9 }
 0x63d   :  { %1503 = vmatmul.msk.bf16.gmra.mxu2 %vm107_vm1, %v883_v39 }
 0x6a0   :  { %v845_v44 = vpop.f32.mrf.mxu2 }
 0x6a1   :  { %v846_v45 = vadd.f32 %v1525_v28, %v845_v44 }
 0x6a3   :  { %v850_v50 = vmax.f32 %v846_v45, 0.0 }
 0x6a8   :  { %v847_v47 = vpop.f32.mrf.mxu2 }
 0x6a9   :  { %v848_v49 = vadd.f32 %v1525_v28, %v847_v47 }
 0x6ab   :  { %v851_v52 = vmax.f32 %v848_v49, 0.0 }
 0x6ad   :  { %v1088_v11 = vpack.c.bf16 %v851_v52, %v850_v50 }
 0x6af   :  { %1504 = vmatmul.msk.bf16.vlgmr.msra.gmra.mxu3 %vm72_vm0, %v1088_v11 }
 0x6b0   :  { %v2178_v53 = vpop.f32.mrf.mxu2 }
 0x6b1   :  { %v914_v32 = vmul.f32 %v2178_v53, %v2178_v53 }
 0x6b3   :  { %v918_v54 = vsel %vm72_vm0, %v914_v32, 0.0 }
 0x6b4   :  { %919 = vadd.xlane.f32.xlu1 %v918_v54 }
 0x6b8   :  { %v2183_v17 = vpop.f32.mrf.mxu2 }
 0x6b9   :  { %v915_v55 = vmul.f32 %v2183_v17, %v2183_v17 }
 0x6bb   :  { %v921_v36 = vsel %vm72_vm0, %v915_v55, 0.0 }
 0x6bc   :  { %922 = vadd.xlane.f32.xlu2 %v921_v36 }
 0x6c0   :  { %v2188_v58 = vpop.f32.mrf.mxu2 }
 0x6c1   :  { %v916_v60 = vmul.f32 %v2188_v58, %v2188_v58 }
 0x6c3   :  { %v924_v0 = vsel %vm72_vm0, %v916_v60, 0.0 }
 0x6c4   :  { %925 = vadd.xlane.f32.xlu1 %v924_v0 }
 0x6c8   :  { %v2193_v30 = vpop.f32.mrf.mxu2 }
 0x6c9   :  { %v917_v1 = vmul.f32 %v2193_v30, %v2193_v30 }
 0x6cb   :  { %v927_v48 = vsel %vm72_vm0, %v917_v1, 0.0 }
 0x6cc   :  { %928 = vadd.xlane.f32.xlu2 %v927_v48 }
 0x727   :  { %v920_v24 = vpop.xlane.xlu1 %919 }
 0x728   :  { %1615 = vrsqrt.f32 %v920_v24  ;;  %vm937_vm1 = vcmp.eq.f32.partialorder %v920_v24, inf  ;;  %v940_v22 = vand.u32 2147483648, %v920_v24  ;;  %vm939_vm11 = vcmp.eq.f32.partialorder %v920_v24, 0.0 }
 0x72e   :  { %v1616_v2 = vpop.eup %1615 }
 0x72f   :  { %v931_v7 = vmul.f32 %v1616_v2, %v920_v24  ;;  %v923_v51 = vpop.xlane.xlu2 %922 }
 0x730   :  { %1617 = vrsqrt.f32 %v923_v51  ;;  %vm949_vm3 = vcmp.eq.f32.partialorder %v923_v51, inf  ;;  %v952_v25 = vand.u32 2147483648, %v923_v51  ;;  %vm951_vm4 = vcmp.eq.f32.partialorder %v923_v51, 0.0 }
 0x731   :  { %v932_v3 = vmul.f32 %v1616_v2, %v931_v7 }
 0x732   :  { %v1102_v40 = vpop.f32.mrf.mxu3 }
 0x733   :  { %v933_v6 = vmul.f32 0.5, %v932_v3 }
 0x735   :  { %v934_v10 = vsub.f32 1.5, %v933_v6 }
 0x736   :  { %v1618_v13 = vpop.eup %1617 }
 0x737   :  { %v935_v12 = vmul.f32 %v1616_v2, %v934_v10  ;;  %v943_v15 = vmul.f32 %v1618_v13, %v923_v51  ;;  %v926_v4 = vpop.xlane.xlu1 %925 }
 0x738   :  { %1619 = vrsqrt.f32 %v926_v4  ;;  %vm961_vm5 = vcmp.eq.f32.partialorder %v926_v4, inf  ;;  %v964_v47 = vand.u32 2147483648, %v926_v4  ;;  %vm963_vm8 = vcmp.eq.f32.partialorder %v926_v4, 0.0 }
 0x739   :  { %v936_v19 = vmul.f32 %v935_v12, %v920_v24  ;;  %v944_v41 = vmul.f32 %v1618_v13, %v943_v15 }
 0x73a   :  { %v1104_v23 = vpop.f32.mrf.mxu3 }
 0x73b   :  { %v938_v46 = vsel %vm937_vm1, %v920_v24, %v936_v19  ;;  %v945_v8 = vmul.f32 0.5, %v944_v41  ;;  %v1109_v21 = vpack.c.bf16 %v1104_v23, %v1102_v40 }
 0x73c   :  { %v941_v14 = vsel %vm939_vm11, %v940_v22, %v938_v46 }
 0x73d   :  { %v978_v56 = vmax.f32 %v941_v14, 1e-12  ;;  %v946_v5 = vsub.f32 1.5, %v945_v8  ;;  %1153 = vmatpush.bf16.msra.mxu1 %v1109_v21 }
 0x73e   :  { %v1620_v61 = vpop.eup %1619 }
 0x73f   :  { %1621 = vrcp.f32 %v978_v56  ;;  %v947_v62 = vmul.f32 %v1618_v13, %v946_v5  ;;  %v955_v63 = vmul.f32 %v1620_v61, %v926_v4  ;;  %v929_v26 = vpop.xlane.xlu2 %928  ;;  %v993_v45 = vand.u32 2147483648, %v978_v56 }
 0x740   :  { %1623 = vrsqrt.f32 %v929_v26  ;;  %v991_v50 = vand.u32 2147483647, %v978_v56  ;;  %vm987_vm9 = vweird.f32 %v978_v56  ;;  %vm973_vm13 = vcmp.eq.f32.partialorder %v929_v26, inf }
 0x741   :  { %v948_v27 = vmul.f32 %v947_v62, %v923_v51  ;;  %v956_v29 = vmul.f32 %v1620_v61, %v955_v63  ;;  %v994_v0 = vor.u32 1.1754944e-38, %v993_v45  ;;  %v976_v40 = vand.u32 2147483648, %v929_v26 }
 0x742   :  { %vm992_vm12 = vcmp.eq.f32.partialorder %v991_v50, 8.507059e+37  ;;  %vm975_vm15 = vcmp.eq.f32.partialorder %v929_v26, 0.0 }
 0x743   :  { %v950_v57 = vsel %vm949_vm3, %v923_v51, %v948_v27  ;;  %v957_v35 = vmul.f32 0.5, %v956_v29 }
 0x744   :  { %v953_v59 = vsel %vm951_vm4, %v952_v25, %v950_v57 }
 0x745   :  { %v1622_v37 = vpop.eup %1621  ;;  %v979_v31 = vmax.f32 %v953_v59, 1e-12  ;;  %v958_v9 = vsub.f32 1.5, %v957_v35 }
 0x746   :  { %v1624_v38 = vpop.eup %1623  ;;  %v983_v39 = vmul.f32 %v1622_v37, %v978_v56  ;;  %vm988_vm7 = vweird.f32 %v1622_v37 }
 0x747   :  { %1625 = vrcp.f32 %v979_v31  ;;  %v959_v42 = vmul.f32 %v1620_v61, %v958_v9  ;;  %v967_v43 = vmul.f32 %v1624_v38, %v929_v26  ;;  %vm989_vm10 = vmor %vm987_vm9, %vm988_vm7  ;;  %v1008_v6 = vand.u32 2147483648, %v979_v31 }
 0x748   :  { %v984_v16 = vsub.f32 1.0, %v983_v39  ;;  %v1006_v12 = vand.u32 2147483647, %v979_v31  ;;  %vm1002_vm2 = vweird.f32 %v979_v31 }
 0x749   :  { %v960_v44 = vmul.f32 %v959_v42, %v926_v4  ;;  %v968_v28 = vmul.f32 %v1624_v38, %v967_v43 }
 0x74a   :  { %v985_v49 = vmul.f32 %v1622_v37, %v984_v16  ;;  %vm1007_vm11 = vcmp.eq.f32.partialorder %v1006_v12, 8.507059e+37 }
 0x74b   :  { %v962_v52 = vsel %vm961_vm5, %v926_v4, %v960_v44  ;;  %v969_v11 = vmul.f32 0.5, %v968_v28 }
 0x74c   :  { %v965_v32 = vsel %vm963_vm8, %v964_v47, %v962_v52  ;;  %v986_v54 = vadd.f32 %v1622_v37, %v985_v49 }
 0x74d   :  { %v1626_v55 = vpop.eup %1625  ;;  %v980_v36 = vmax.f32 %v965_v32, 1e-12  ;;  %v970_v60 = vsub.f32 1.5, %v969_v11 }
 0x74e   :  { %v990_v1 = vsel %vm989_vm10, %v1622_v37, %v986_v54  ;;  %v998_v48 = vmul.f32 %v1626_v55, %v979_v31  ;;  %vm1003_vm14 = vweird.f32 %v1626_v55 }
 0x74f   :  { %1627 = vrcp.f32 %v980_v36  ;;  %v971_v24 = vmul.f32 %v1624_v38, %v970_v60  ;;  %v995_v2 = vsel %vm992_vm12, %v994_v0, %v990_v1  ;;  %vm1004_vm1 = vmor %vm1002_vm2, %vm1003_vm14  ;;  %v1023_v56 = vand.u32 2147483648, %v980_v36 }
 0x750   :  { %v996_v7 = vmul.f32 %v995_v2, %v2178_v53  ;;  %v999_v51 = vsub.f32 1.0, %v998_v48  ;;  %v1009_v53 = vor.u32 1.1754944e-38, %v1008_v6  ;;  %v1021_v62 = vand.u32 2147483647, %v980_v36 }
 0x751   :  { %v972_v3 = vmul.f32 %v971_v24, %v929_v26  ;;  %vm1017_vm4 = vweird.f32 %v980_v36  ;;  %v1024_v27 = vor.u32 1.1754944e-38, %v1023_v56 }
 0x752   :  { %v1042_v10 = vsel %vm72_vm0, %v996_v7, -inf  ;;  %v1000_v13 = vmul.f32 %v1626_v55, %v999_v51  ;;  %vm1022_vm7 = vcmp.eq.f32.partialorder %v1021_v62, 8.507059e+37  ;;  %v1166_v51 = vld [vmem:[%s2286_s14] sm:$0xf] }
 0x753   :  { %v974_v15 = vsel %vm973_vm13, %v929_v26, %v972_v3  ;;  %1043 = vmax.xlane.f32.xlu1 %v1042_v10  ;;  %vm1174_vm13 = vcmask 31744  }
 0x754   :  { %v977_v4 = vsel %vm975_vm15, %v976_v40, %v974_v15  ;;  %v1001_v19 = vadd.f32 %v1626_v55, %v1000_v13 }
 0x755   :  { %v1628_v41 = vpop.eup %1627  ;;  %v981_v22 = vmax.f32 %v977_v4, 1e-12 }
 0x756   :  { %v1005_v23 = vsel %vm1004_vm1, %v1626_v55, %v1001_v19  ;;  %v1013_v46 = vmul.f32 %v1628_v41, %v980_v36  ;;  %vm1018_vm3 = vweird.f32 %v1628_v41 }
 0x757   :  { %1629 = vrcp.f32 %v981_v22  ;;  %v1010_v8 = vsel %vm1007_vm11, %v1009_v53, %v1005_v23  ;;  %vm1019_vm5 = vmor %vm1017_vm4, %vm1018_vm3  ;;  %v1038_v59 = vand.u32 2147483648, %v981_v22  ;;  %v1036_v9 = vand.u32 2147483647, %v981_v22 }
 0x758   :  { %v1011_v21 = vmul.f32 %v1010_v8, %v2183_v17  ;;  %v1014_v14 = vsub.f32 1.0, %v1013_v46  ;;  %vm1032_vm9 = vweird.f32 %v981_v22  ;;  %v1130_v8 = vpop.f32.mrf.mxu0 }
 0x759   :  { %v1039_v39 = vor.u32 1.1754944e-38, %v1038_v59  ;;  %vm1037_vm12 = vcmp.eq.f32.partialorder %v1036_v9, 8.507059e+37 }
 0x75a   :  { %v1045_v5 = vsel %vm72_vm0, %v1011_v21, -inf  ;;  %v1015_v61 = vmul.f32 %v1628_v41, %v1014_v14 }
 0x75b   :  { %1046 = vmax.xlane.f32.xlu2 %v1045_v5 }
 0x75c   :  { %v1016_v63 = vadd.f32 %v1628_v41, %v1015_v61 }
 0x75d   :  { %v1630_v26 = vpop.eup %1629 }
 0x75e   :  { %v1020_v29 = vsel %vm1019_vm5, %v1628_v41, %v1016_v63  ;;  %v1028_v25 = vmul.f32 %v1630_v26, %v981_v22  ;;  %vm1033_vm8 = vweird.f32 %v1630_v26 }
 0x75f   :  { %v1025_v57 = vsel %vm1022_vm7, %v1024_v27, %v1020_v29  ;;  %vm1034_vm10 = vmor %vm1032_vm9, %vm1033_vm8 }
 0x760   :  { %v1026_v35 = vmul.f32 %v1025_v57, %v2188_v58  ;;  %v1029_v17 = vsub.f32 1.0, %v1028_v25  ;;  %v1132_v61 = vpop.f32.mrf.mxu0 }
 0x762   :  { %v1048_v37 = vsel %vm72_vm0, %v1026_v35, -inf  ;;  %v1030_v31 = vmul.f32 %v1630_v26, %v1029_v17 }
 0x763   :  { %1049 = vmax.xlane.f32.xlu1 %v1048_v37 }
 0x764   :  { %v1031_v38 = vadd.f32 %v1630_v26, %v1030_v31 }
 0x766   :  { %v1035_v42 = vsel %vm1034_vm10, %v1630_v26, %v1031_v38 }
 0x767   :  { %v1040_v43 = vsel %vm1037_vm12, %v1039_v39, %v1035_v42 }
 0x768   :  { %v1041_v16 = vmul.f32 %v1040_v43, %v2193_v30  ;;  %v1135_v25 = vpop.f32.mrf.mxu0 }
 0x76a   :  { %v1051_v44 = vsel %vm72_vm0, %v1041_v16, -inf }
 0x76b   :  { %1052 = vmax.xlane.f32.xlu2 %v1051_v44 }
 0x770   :  { %v1137_v37 = vpop.f32.mrf.mxu0 }
 0x7c6   :  { %v1044_v58 = vpop.xlane.xlu1 %1043 }
 0x7c7   :  { %v1054_v28 = vsub.f32 %v996_v7, %v1044_v58 }
 0x7c9   :  { %v1058_v45 = vmul.f32 1.442695, %v1054_v28 }
 0x7cb   :  { %1631 = vpow2.f32 %v1058_v45 }
 0x7ce   :  { %v1047_v47 = vpop.xlane.xlu2 %1046 }
 0x7cf   :  { %v1055_v49 = vsub.f32 %v1011_v21, %v1047_v47  ;;  %v1526_v21 = vld [vmem:[%s2287_s13] ss:$0 sm:$0xff] }
 0x7d1   :  { %v1632_v50 = vpop.eup %1631  ;;  %v1060_v52 = vmul.f32 1.442695, %v1055_v49 }
 0x7d2   :  { %v1066_v11 = vsel %vm72_vm0, %v1632_v50, 0.0 }
 0x7d3   :  { %1633 = vpow2.f32 %v1060_v52  ;;  %1067 = vadd.xlane.f32.xlu1 %v1066_v11 }
 0x7d6   :  { %v1050_v32 = vpop.xlane.xlu1 %1049 }
 0x7d7   :  { %v1056_v54 = vsub.f32 %v1026_v35, %v1050_v32 }
 0x7d9   :  { %v1634_v55 = vpop.eup %1633  ;;  %v1062_v36 = vmul.f32 1.442695, %v1056_v54 }
 0x7da   :  { %v1069_v30 = vsel %vm72_vm0, %v1634_v55, 0.0 }
 0x7db   :  { %1635 = vpow2.f32 %v1062_v36  ;;  %1070 = vadd.xlane.f32.xlu2 %v1069_v30 }
 0x7de   :  { %v1053_v60 = vpop.xlane.xlu2 %1052 }
 0x7df   :  { %v1057_v0 = vsub.f32 %v1041_v16, %v1053_v60 }
 0x7e1   :  { %v1636_v1 = vpop.eup %1635  ;;  %v1064_v48 = vmul.f32 1.442695, %v1057_v0 }
 0x7e2   :  { %v1072_v24 = vsel %vm72_vm0, %v1636_v1, 0.0 }
 0x7e3   :  { %1637 = vpow2.f32 %v1064_v48  ;;  %1073 = vadd.xlane.f32.xlu1 %v1072_v24 }
 0x7e9   :  { %v1638_v2 = vpop.eup %1637 }
 0x7ea   :  { %v1075_v7 = vsel %vm72_vm0, %v1638_v2, 0.0 }
 0x7eb   :  { %1076 = vadd.xlane.f32.xlu2 %v1075_v7 }
 0x81d   :  { %1187 = vxpose.xlu1.b32.start.end [1/1] (short) (narrow) %v1166_v51, 8 }
 0x846   :  { %v1068_v3 = vpop.xlane.xlu1 %1067 }
 0x847   :  { %1639 = vrcp.f32 %v1068_v3 }
 0x84d   :  { %v1640_v6 = vpop.eup %1639 }
 0x84e   :  { %v1071_v40 = vpop.xlane.xlu2 %1070  ;;  %v1082_v13 = vmul.f32 %v1640_v6, %v1632_v50 }
 0x84f   :  { %1641 = vrcp.f32 %v1071_v40 }
 0x855   :  { %v1642_v10 = vpop.eup %1641 }
 0x856   :  { %v1083_v12 = vmul.f32 %v1642_v10, %v1634_v55  ;;  %v1074_v4 = vpop.xlane.xlu1 %1073 }
 0x857   :  { %1643 = vrcp.f32 %v1074_v4 }
 0x858   :  { %v1107_v15 = vpack.c.bf16 %v1083_v12, %v1082_v13 }
 0x85a   :  { %1507 = vmatmul.msk.bf16.vlgmr.msra.gmra.mxu1 %vm72_vm0, %v1107_v15 }
 0x85d   :  { %v1644_v41 = vpop.eup %1643 }
 0x85e   :  { %v1077_v19 = vpop.xlane.xlu2 %1076  ;;  %v1084_v53 = vmul.f32 %v1644_v41, %v1636_v1 }
 0x85f   :  { %1645 = vrcp.f32 %v1077_v19 }
 0x865   :  { %v1646_v22 = vpop.eup %1645 }
 0x866   :  { %v1085_v23 = vmul.f32 %v1646_v22, %v1638_v2 }
 0x868   :  { %v1108_v46 = vpack.c.bf16 %v1085_v23, %v1084_v53 }
 0x86a   :  { %1508 = vmatmul.msk.bf16.gmra.mxu1 %vm72_vm0, %v1108_v46 }
 0x8c1   :  { %v1203_v43 = vpop.trf.xlu1 }
 0x8d7   :  { %v1155_v14 = vpop.f32.mrf.mxu1 }
 0x8d8   :  { %v1156_v56 = vadd.f32 %v1155_v14, %v1130_v8 }
 0x8da   :  { %v1170_v5 = vmul.f32 %v1526_v21, %v1156_v56 }
 0x8dc   :  { %v1175_v62 = vsel %vm1174_vm13, %v1170_v5, 0.0 }
 0x8dd   :  { %1176 = vadd.xlane.f32.xlu2 %v1175_v62 }
 0x8df   :  { %v1157_v63 = vpop.f32.mrf.mxu1 }
 0x8e0   :  { %v1158_v26 = vadd.f32 %v1157_v63, %v1132_v61 }
 0x8e2   :  { %v1171_v27 = vmul.f32 %v1526_v21, %v1158_v26  ;;  %v1321_v16 = vpack.c.bf16 %v1158_v26, %v1156_v56 }
 0x8e4   :  { %v1178_v29 = vsel %vm1174_vm13, %v1171_v27, 0.0 }
 0x8e5   :  { %1179 = vadd.xlane.f32.xlu2 %v1178_v29 }
 0x8e7   :  { %v1160_v57 = vpop.f32.mrf.mxu1 }
 0x8e8   :  { %v1161_v35 = vadd.f32 %v1160_v57, %v1135_v25 }
 0x8ea   :  { %v1172_v17 = vmul.f32 %v1526_v21, %v1161_v35 }
 0x8ec   :  { %v1181_v59 = vsel %vm1174_vm13, %v1172_v17, 0.0 }
 0x8ed   :  { %1182 = vadd.xlane.f32.xlu2 %v1181_v59 }
 0x8ef   :  { %v1162_v31 = vpop.f32.mrf.mxu1 }
 0x8f0   :  { %v1163_v9 = vadd.f32 %v1162_v31, %v1137_v37 }
 0x8f2   :  { %1509 = vmatpush.xpose.msk.msrb.mxu2 %vm1174_vm13, %v1163_v9  ;;  %v1173_v38 = vmul.f32 %v1526_v21, %v1163_v9  ;;  %v1322_v42 = vpack.c.bf16 %v1163_v9, %v1161_v35 }
 0x8f4   :  { %v1184_v39 = vsel %vm1174_vm13, %v1173_v38, 0.0 }
 0x8f5   :  { %1185 = vadd.xlane.f32.xlu2 %v1184_v39 }
 0x8f6   :  { %1510 = vmatpush.xpose.msk.msrb.mxu2 %vm1174_vm13, %v1161_v35 }
 0x8fa   :  { %1511 = vmatpush.xpose.msk.msrb.mxu2 %vm1174_vm13, %v1158_v26 }
 0x8fe   :  { %1512 = vmatpush.xpose.msk.msrb.mxu2 %vm1174_vm13, %v1156_v56 }
 0x901   :  { %1513 = vmatmul.msk.f32.vlgmr.msrb.gmra.mxu2 %vm1174_vm13, %v1203_v43 }
 0x902   :  { %1335 = vmatpush.bf16.msra.mxu2 %v1322_v42 }
 0x906   :  { %1336 = vmatpush.bf16.msra.mxu2 %v1321_v16 }
 0x950   :  { %v1177_v44 = vpop.xlane.xlu2 %1176 }
 0x958   :  { %v1180_v58 = vpop.xlane.xlu2 %1179 }
 0x960   :  { %v1183_v28 = vpop.xlane.xlu2 %1182 }
 0x968   :  { %v1186_v0 = vpop.xlane.xlu2 %1185 }
 0x984   :  { %v1251_v45 = vpop.f32.mrf.mxu2 }
 0x985   :  { %v1254_v47 = vperm.slane %v1251_v45, 0 }
 0x987   :  { %v1255_v49 = vadd.f32 %v1254_v47, %v1177_v44  ;;  %v1257_v50 = vadd.f32 %v1254_v47, %v1183_v28  ;;  %v1256_v52 = vadd.f32 %v1254_v47, %v1180_v58  ;;  %v1258_v2 = vadd.f32 %v1254_v47, %v1186_v0 }
 0x989   :  { %vm1259_vm0 = vcmp.gt.f32.partialorder %v1255_v49, 0.0  ;;  %v1263_v11 = vmul.f32 0.2, %v1255_v49  ;;  %vm1261_vm14 = vcmp.gt.f32.partialorder %v1257_v50, 0.0  ;;  %v1265_v32 = vmul.f32 0.2, %v1257_v50 }
 0x98a   :  { %v1264_v36 = vmul.f32 0.2, %v1256_v52  ;;  %vm1260_vm15 = vcmp.gt.f32.partialorder %v1256_v52, 0.0  ;;  %v1266_v51 = vmul.f32 0.2, %v1258_v2  ;;  %vm1262_vm2 = vcmp.gt.f32.partialorder %v1258_v2, 0.0 }
 0x98b   :  { %v1267_v54 = vsel %vm1259_vm0, %v1255_v49, %v1263_v11  ;;  %v1269_v55 = vsel %vm1261_vm14, %v1257_v50, %v1265_v32 }
 0x98c   :  { %v1271_v30 = vadd.f32 %v1267_v54, %v1877_v20  ;;  %v1273_v60 = vadd.f32 %v1269_v55, %v1818_v33  ;;  %v1268_v24 = vsel %vm1260_vm15, %v1256_v52, %v1264_v36  ;;  %v1270_v20 = vsel %vm1262_vm2, %v1258_v2, %v1266_v51 }
 0x98d   :  { %v1272_v7 = vadd.f32 %v1268_v24, %v1874_v18  ;;  %v1274_v33 = vadd.f32 %v1270_v20, %v1821_v34 }
 0x98e   :  { %v1275_v1 = vsel %vm208_vm6, %v1271_v30, -inf  ;;  %v1281_v48 = vsel %vm208_vm6, %v1273_v60, -inf }
 0x98f   :  { %1276 = vmax.xlane.f32.xlu2 %v1275_v1  ;;  %1282 = vmax.xlane.f32.xlu0 %v1281_v48  ;;  %v1278_v3 = vsel %vm208_vm6, %v1272_v7, -inf  ;;  %v1284_v40 = vsel %vm208_vm6, %v1274_v33, -inf }
 0x997   :  { %1279 = vmax.xlane.f32.xlu2 %v1278_v3 }
 0x99f   :  { %1285 = vmax.xlane.f32.xlu2 %v1284_v40 }
 0xa02   :  { %v1277_v6 = vpop.xlane.xlu2 %1276  ;;  %v1283_v10 = vpop.xlane.xlu0 %1282 }
 0xa03   :  { %v1287_v13 = vsub.f32 %v1271_v30, %v1277_v6  ;;  %v1289_v15 = vsub.f32 %v1273_v60, %v1283_v10 }
 0xa05   :  { %v1291_v12 = vmul.f32 1.442695, %v1287_v13  ;;  %v1295_v4 = vmul.f32 1.442695, %v1289_v15 }
 0xa07   :  { %1647 = vpow2.f32 %v1291_v12 }
 0xa08   :  { %1649 = vpow2.f32 %v1295_v4 }
 0xa0a   :  { %v1280_v19 = vpop.xlane.xlu2 %1279 }
 0xa0b   :  { %v1288_v18 = vsub.f32 %v1272_v7, %v1280_v19 }
 0xa0d   :  { %v1293_v41 = vmul.f32 1.442695, %v1288_v18  ;;  %v1648_v22 = vpop.eup %1647 }
 0xa0e   :  { %v1299_v53 = vsel %vm208_vm6, %v1648_v22, 0.0  ;;  %v1650_v46 = vpop.eup %1649 }
 0xa0f   :  { %1651 = vpow2.f32 %v1293_v41  ;;  %1300 = vadd.xlane.f32.xlu2 %v1299_v53  ;;  %v1305_v56 = vsel %vm208_vm6, %v1650_v46, 0.0 }
 0xa12   :  { %v1286_v34 = vpop.xlane.xlu2 %1285 }
 0xa13   :  { %v1290_v23 = vsub.f32 %v1274_v33, %v1286_v34 }
 0xa15   :  { %v1652_v8 = vpop.eup %1651  ;;  %v1297_v21 = vmul.f32 1.442695, %v1290_v23 }
 0xa16   :  { %v1302_v14 = vsel %vm208_vm6, %v1652_v8, 0.0 }
 0xa17   :  { %1653 = vpow2.f32 %v1297_v21  ;;  %1303 = vadd.xlane.f32.xlu1 %v1302_v14  ;;  %1306 = vadd.xlane.f32.xlu2 %v1305_v56 }
 0xa1d   :  { %v1654_v5 = vpop.eup %1653 }
 0xa1e   :  { %v1308_v61 = vsel %vm208_vm6, %v1654_v5, 0.0 }
 0xa1f   :  { %1309 = vadd.xlane.f32.xlu2 %v1308_v61 }
 0xa82   :  { %v1301_v62 = vpop.xlane.xlu2 %1300 }
 0xa83   :  { %1655 = vrcp.f32 %v1301_v62 }
 0xa89   :  { %v1656_v27 = vpop.eup %1655 }
 0xa8a   :  { %v1304_v63 = vpop.xlane.xlu1 %1303  ;;  %v1307_v26 = vpop.xlane.xlu2 %1306  ;;  %v1315_v25 = vmul.f32 %v1656_v27, %v1648_v22 }
 0xa8b   :  { %1657 = vrcp.f32 %v1304_v63 }
 0xa91   :  { %v1658_v29 = vpop.eup %1657 }
 0xa92   :  { %v1316_v57 = vmul.f32 %v1658_v29, %v1652_v8  ;;  %v1310_v17 = vpop.xlane.xlu2 %1309 }
 0xa93   :  { %1659 = vrcp.f32 %v1310_v17 }
 0xa94   :  { %v1319_v35 = vpack.c.bf16 %v1316_v57, %v1315_v25  ;;  %1661 = vrcp.f32 %v1307_v26 }
 0xa96   :  { %1514 = vmatmul.msk.bf16.vlgmr.msra.gmra.mxu2 %vm208_vm6, %v1319_v35 }
 0xa99   :  { %v1660_v59 = vpop.eup %1659 }
 0xa9a   :  { %v1662_v37 = vpop.eup %1661  ;;  %v1318_v31 = vmul.f32 %v1660_v59, %v1654_v5 }
 0xa9b   :  { %v1317_v9 = vmul.f32 %v1662_v37, %v1650_v46 }
 0xa9d   :  { %v1320_v38 = vpack.c.bf16 %v1318_v31, %v1317_v9 }
 0xaa6   :  { %1515 = vmatmul.msk.bf16.gmra.mxu2 %vm208_vm6, %v1320_v38 }
 0xb19   :  { %v1338_v39 = vpop.f32.mrf.mxu2 }
 0xb1a   :  { %v1352_v42 = vmin.f32 %v1338_v39, 0.0  ;;  %vm1348_vm1 = vcmp.gt.f32.partialorder %v1338_v39, 0.0 }
 0xb1c   :  { %v1356_v43 = vmul.f32 1.442695, %v1352_v42 }
 0xb1e   :  { %1663 = vpow2.f32 %v1356_v43 }
 0xb21   :  { %v1340_v16 = vpop.f32.mrf.mxu2 }
 0xb22   :  { %v1353_v44 = vmin.f32 %v1340_v16, 0.0  ;;  %vm1349_vm6 = vcmp.gt.f32.partialorder %v1340_v16, 0.0 }
 0xb24   :  { %v1664_v58 = vpop.eup %1663  ;;  %v1358_v28 = vmul.f32 1.442695, %v1353_v44 }
 0xb25   :  { %v1516_v45 = vadd.f32 -1.0, %v1664_v58 }
 0xb26   :  { %1665 = vpow2.f32 %v1358_v28 }
 0xb27   :  { %v1368_v47 = vsel %vm1348_vm1, %v1338_v39, %v1516_v45 }
 0xb28   :  { %v1372_v49 = vsel %vm1174_vm13, %v1368_v47, -inf }
 0xb29   :  { %1373 = vmax.xlane.f32.xlu2 %v1372_v49  ;;  %v1343_v50 = vpop.f32.mrf.mxu2 }
 0xb2a   :  { %v1354_v52 = vmin.f32 %v1343_v50, 0.0  ;;  %vm1350_vm11 = vcmp.gt.f32.partialorder %v1343_v50, 0.0 }
 0xb2c   :  { %v1666_v11 = vpop.eup %1665  ;;  %v1360_v32 = vmul.f32 1.442695, %v1354_v52 }
 0xb2d   :  { %v1517_v54 = vadd.f32 -1.0, %v1666_v11 }
 0xb2e   :  { %1667 = vpow2.f32 %v1360_v32 }
 0xb2f   :  { %v1369_v55 = vsel %vm1349_vm6, %v1340_v16, %v1517_v54 }
 0xb30   :  { %v1375_v36 = vsel %vm1174_vm13, %v1369_v55, -inf }
 0xb31   :  { %1376 = vmax.xlane.f32.xlu2 %v1375_v36  ;;  %v1345_v30 = vpop.f32.mrf.mxu2 }
 0xb32   :  { %v1355_v60 = vmin.f32 %v1345_v30, 0.0  ;;  %vm1351_vm3 = vcmp.gt.f32.partialorder %v1345_v30, 0.0 }
 0xb34   :  { %v1668_v0 = vpop.eup %1667  ;;  %v1362_v1 = vmul.f32 1.442695, %v1355_v60 }
 0xb35   :  { %v1518_v48 = vadd.f32 -1.0, %v1668_v0 }
 0xb36   :  { %1669 = vpow2.f32 %v1362_v1 }
 0xb37   :  { %v1370_v24 = vsel %vm1350_vm11, %v1343_v50, %v1518_v48 }
 0xb38   :  { %v1378_v2 = vsel %vm1174_vm13, %v1370_v24, -inf }
 0xb39   :  { %1379 = vmax.xlane.f32.xlu2 %v1378_v2 }
 0xb3c   :  { %v1670_v7 = vpop.eup %1669 }
 0xb3d   :  { %v1519_v51 = vadd.f32 -1.0, %v1670_v7 }
 0xb3f   :  { %v1371_v3 = vsel %vm1351_vm3, %v1345_v30, %v1519_v51 }
 0xb40   :  { %v1381_v20 = vsel %vm1174_vm13, %v1371_v3, -inf }
 0xb41   :  { %1382 = vmax.xlane.f32.xlu2 %v1381_v20 }
 0xb9c   :  { %v1374_v33 = vpop.xlane.xlu2 %1373 }
 0xb9d   :  { %v1384_v40 = vsub.f32 %v1368_v47, %v1374_v33 }
 0xb9f   :  { %v1388_v6 = vmul.f32 1.442695, %v1384_v40 }
 0xba1   :  { %1671 = vpow2.f32 %v1388_v6 }
 0xba4   :  { %v1377_v10 = vpop.xlane.xlu2 %1376 }
 0xba5   :  { %v1385_v13 = vsub.f32 %v1369_v55, %v1377_v10 }
 0xba7   :  { %v1672_v12 = vpop.eup %1671  ;;  %v1390_v15 = vmul.f32 1.442695, %v1385_v13 }
 0xba8   :  { %v1396_v4 = vsel %vm1174_vm13, %v1672_v12, 0.0 }
 0xba9   :  { %1673 = vpow2.f32 %v1390_v15  ;;  %1397 = vadd.xlane.f32.xlu2 %v1396_v4 }
 0xbac   :  { %v1380_v19 = vpop.xlane.xlu2 %1379 }
 0xbad   :  { %v1386_v18 = vsub.f32 %v1370_v24, %v1380_v19 }
 0xbaf   :  { %v1674_v41 = vpop.eup %1673  ;;  %v1392_v22 = vmul.f32 1.442695, %v1386_v18 }
 0xbb0   :  { %v1399_v53 = vsel %vm1174_vm13, %v1674_v41, 0.0 }
 0xbb1   :  { %1675 = vpow2.f32 %v1392_v22  ;;  %1400 = vadd.xlane.f32.xlu2 %v1399_v53 }
 0xbb4   :  { %v1383_v34 = vpop.xlane.xlu2 %1382 }
 0xbb5   :  { %v1387_v23 = vsub.f32 %v1371_v3, %v1383_v34 }
 0xbb7   :  { %v2247_v46 = vpop.eup %1675  ;;  %v1394_v8 = vmul.f32 1.442695, %v1387_v23 }
 0xbb8   :  { %v1402_v21 = vsel %vm1174_vm13, %v2247_v46, 0.0 }
 0xbb9   :  { %1677 = vpow2.f32 %v1394_v8  ;;  %1403 = vadd.xlane.f32.xlu2 %v1402_v21 }
 0xbbf   :  { %v2251_v14 = vpop.eup %1677 }
 0xbc0   :  { %v1405_v56 = vsel %vm1174_vm13, %v2251_v14, 0.0 }
 0xbc1   :  { %1406 = vadd.xlane.f32.xlu2 %v1405_v56 }
 0xc1c   :  { %v1398_v5 = vpop.xlane.xlu2 %1397 }
 0xc1d   :  { %1679 = vrcp.f32 %v1398_v5  ;;  %v1419_v27 = vand.u32 2147483648, %v1398_v5  ;;  %v1417_v25 = vand.u32 2147483647, %v1398_v5  ;;  %vm1413_vm5 = vweird.f32 %v1398_v5 }
 0xc1f   :  { %v1420_v17 = vor.u32 1.1754944e-38, %v1419_v27  ;;  %vm1418_vm8 = vcmp.eq.f32.partialorder %v1417_v25, 8.507059e+37 }
 0xc23   :  { %v1680_v61 = vpop.eup %1679 }
 0xc24   :  { %v1409_v62 = vmul.f32 %v1680_v61, %v1398_v5  ;;  %v1401_v63 = vpop.xlane.xlu2 %1400  ;;  %vm1414_vm4 = vweird.f32 %v1680_v61 }
 0xc25   :  { %1681 = vrcp.f32 %v1401_v63  ;;  %vm1415_vm7 = vmor %vm1413_vm5, %vm1414_vm4  ;;  %v1434_v42 = vand.u32 2147483648, %v1401_v63  ;;  %v1432_v16 = vand.u32 2147483647, %v1401_v63  ;;  %vm1428_vm10 = vweird.f32 %v1401_v63 }
 0xc26   :  { %v1410_v26 = vsub.f32 1.0, %v1409_v62 }
 0xc27   :  { %v1435_v28 = vor.u32 1.1754944e-38, %v1434_v42  ;;  %vm1433_vm0 = vcmp.eq.f32.partialorder %v1432_v16, 8.507059e+37 }
 0xc28   :  { %v1411_v29 = vmul.f32 %v1680_v61, %v1410_v26 }
 0xc2a   :  { %v1412_v57 = vadd.f32 %v1680_v61, %v1411_v29 }
 0xc2b   :  { %v1682_v35 = vpop.eup %1681 }
 0xc2c   :  { %v1416_v59 = vsel %vm1415_vm7, %v1680_v61, %v1412_v57  ;;  %v1424_v37 = vmul.f32 %v1682_v35, %v1401_v63  ;;  %v1404_v31 = vpop.xlane.xlu2 %1403  ;;  %vm1429_vm9 = vweird.f32 %v1682_v35 }
 0xc2d   :  { %v1421_v9 = vsel %vm1418_vm8, %v1420_v17, %v1416_v59  ;;  %1683 = vrcp.f32 %v1404_v31  ;;  %vm1430_vm12 = vmor %vm1428_vm10, %vm1429_vm9  ;;  %v1449_v32 = vand.u32 2147483648, %v1404_v31  ;;  %v1447_v55 = vand.u32 2147483647, %v1404_v31 }
 0xc2e   :  { %v1422_v38 = vmul.f32 %v1672_v12, %v1421_v9  ;;  %v1425_v39 = vsub.f32 1.0, %v1424_v37  ;;  %vm1443_vm15 = vweird.f32 %v1404_v31 }
 0xc2f   :  { %v1450_v60 = vor.u32 1.1754944e-38, %v1449_v32  ;;  %vm1448_vm1 = vcmp.eq.f32.partialorder %v1447_v55, 8.507059e+37 }
 0xc30   :  { %1468 = vst.msk [vmem:[%s2288_s15] sm:$0xff] %vm1174_vm13, %v1422_v38  ;;  %v1426_v43 = vmul.f32 %v1682_v35, %v1425_v39 }
 0xc32   :  { %v1427_v44 = vadd.f32 %v1682_v35, %v1426_v43 }
 0xc33   :  { %v1684_v58 = vpop.eup %1683 }
 0xc34   :  { %v1431_v45 = vsel %vm1430_vm12, %v1682_v35, %v1427_v44  ;;  %v1439_v47 = vmul.f32 %v1684_v58, %v1404_v31  ;;  %v1407_v49 = vpop.xlane.xlu2 %1406  ;;  %vm1444_vm14 = vweird.f32 %v1684_v58 }
 0xc35   :  { %v1436_v50 = vsel %vm1433_vm0, %v1435_v28, %v1431_v45  ;;  %1685 = vrcp.f32 %v1407_v49  ;;  %vm1445_vm2 = vmor %vm1443_vm15, %vm1444_vm14  ;;  %v1464_v7 = vand.u32 2147483648, %v1407_v49  ;;  %v1462_v3 = vand.u32 2147483647, %v1407_v49 }
 0xc36   :  { %v1437_v52 = vmul.f32 %v1674_v41, %v1436_v50  ;;  %v1440_v11 = vsub.f32 1.0, %v1439_v47  ;;  %vm1458_vm11 = vweird.f32 %v1407_v49 }
 0xc37   :  { %v1465_v33 = vor.u32 1.1754944e-38, %v1464_v7  ;;  %vm1463_vm4 = vcmp.eq.f32.partialorder %v1462_v3, 8.507059e+37 }
 0xc38   :  { %1469 = vst.msk [vmem:[%s2288_s15 + $0x8] sm:$0xff] %vm1174_vm13, %v1437_v52  ;;  %v1441_v54 = vmul.f32 %v1684_v58, %v1440_v11 }
 0xc3a   :  { %v1442_v36 = vadd.f32 %v1684_v58, %v1441_v54 }
 0xc3b   :  { %v1686_v30 = vpop.eup %1685 }
 0xc3c   :  { %v1446_v0 = vsel %vm1445_vm2, %v1684_v58, %v1442_v36  ;;  %v1454_v1 = vmul.f32 %v1686_v30, %v1407_v49  ;;  %vm1459_vm6 = vweird.f32 %v1686_v30 }
 0xc3d   :  { %v1451_v48 = vsel %vm1448_vm1, %v1450_v60, %v1446_v0  ;;  %vm1460_vm3 = vmor %vm1458_vm11, %vm1459_vm6 }
 0xc3e   :  { %v1452_v24 = vmul.f32 %v2247_v46, %v1451_v48  ;;  %v1455_v2 = vsub.f32 1.0, %v1454_v1 }
 0xc40   :  { %1470 = vst.msk [vmem:[%s2288_s15 + $0x10] sm:$0xff] %vm1174_vm13, %v1452_v24  ;;  %v1456_v51 = vmul.f32 %v1686_v30, %v1455_v2 }
 0xc42   :  { %v1457_v20 = vadd.f32 %v1686_v30, %v1456_v51 }
 0xc44   :  { %v1461_v40 = vsel %vm1460_vm3, %v1686_v30, %v1457_v20 }
 0xc45   :  { %v1466_v6 = vsel %vm1463_vm4, %v1465_v33, %v1461_v40 }
 0xc46   :  { %v1467_v10 = vmul.f32 %v2251_v14, %v1466_v6 }
 0xc48   :  { %1471 = vst.msk [vmem:[%s2288_s15 + $0x18] sm:$0xff] %vm1174_vm13, %v1467_v10 }

</bundles_post_ra>
